<compile_context>
chip_gen: v7x
topology: tpu7x:2x2x1
jax: 0.10.0
libtpu: 0.0.40
codegen_flags: <defaults>
</compile_context>

<pallas_src>
import functools
import math

import jax
import jax.numpy as jnp
from jax.experimental import pallas as pl
from jax.experimental.pallas import tpu as pltpu

_VMEM_LIMIT = 64 * 1024 * 1024


def _round_up(n, m):
    return ((n + m - 1) // m) * m


def _row_grid(n, row_tile):
    tm = min(row_tile, _round_up(n, 8))
    return tm, _round_up(n, tm)


def _pad_rows(x2, np_):
    n = x2.shape[0]
    if np_ != n:
        x2 = jnp.pad(x2, ((0, np_ - n), (0, 0)))
    return x2


def _erf(x):
    # Abramowitz & Stegun 7.1.26 (max abs err ~1.5e-7, i.e. float32 noise level).
    # TODO(synk): switch to lax.erf once its Mosaic lowering is guaranteed.
    ax = jnp.abs(x)
    t = 1.0 / (1.0 + 0.3275911 * ax)
    poly = ((((1.061405429 * t - 1.453152027) * t + 1.421413741) * t
             - 0.284496736) * t + 0.254829592) * t
    y = 1.0 - poly * jnp.exp(-ax * ax)
    return jnp.where(x < 0, -y, y)


def _layernorm_f32(h, gamma, beta, eps):
    mean = jnp.mean(h, axis=-1, keepdims=True)
    c = h - mean
    var = jnp.mean(c * c, axis=-1, keepdims=True)
    return c * jax.lax.rsqrt(var + eps) * gamma + beta


def _mha_f32(q, k, v, mask, *, num_heads, scale):
    """q:(Lq,H), k/v:(Lk,H), mask:(Lq,Lk), all f32 -> (Lq,H) f32 context."""
    H = q.shape[-1]
    dh = H // num_heads
    parts = []
    for h in range(num_heads):   # static unroll; lane slices of VMEM values
        lo, hi = h * dh, (h + 1) * dh
        s = jax.lax.dot_general(q[:, lo:hi], k[:, lo:hi],
                                (((1,), (1,)), ((), ())),
                                preferred_element_type=jnp.float32)
        s = s * scale + mask
        s = s - jnp.max(s, axis=-1, keepdims=True)
        p = jnp.exp(s)
        p = p / jnp.sum(p, axis=-1, keepdims=True)
        parts.append(jnp.dot(p, v[:, lo:hi],
                             preferred_element_type=jnp.float32))
    return jnp.concatenate(parts, axis=-1)


# ---------------------------------------------------------------------------
# Kernels
# ---------------------------------------------------------------------------

def _cross_attn_block_kernel(x_ref, ctx_ref, mask_ref, wq_ref, bq_ref,
                             wkv_ref, bkv_ref, wo_ref, bo_ref, g_ref, bln_ref,
                             o_ref, *, num_heads, scale, eps):
    # Full BertXAttention + BertSelfOutput for one batch element.
    x = x_ref[...]
    H = wq_ref.shape[1]
    q = jnp.dot(x, wq_ref[...], preferred_element_type=jnp.float32)
    q = q + bq_ref[...].astype(jnp.float32)
    kv = jnp.dot(ctx_ref[...], wkv_ref[...], preferred_element_type=jnp.float32)
    kv = kv + bkv_ref[...].astype(jnp.float32)
    ctx = _mha_f32(q, kv[:, :H], kv[:, H:],
                   mask_ref[...].astype(jnp.float32),
                   num_heads=num_heads, scale=scale)
    h = jnp.dot(ctx.astype(wo_ref.dtype), wo_ref[...],
                preferred_element_type=jnp.float32)
    h = h + bo_ref[...].astype(jnp.float32) + x.astype(jnp.float32)
    hn = _layernorm_f32(h, g_ref[...].astype(jnp.float32),
                        bln_ref[...].astype(jnp.float32), eps)
    o_ref[...] = hn.astype(o_ref.dtype)


def _self_attn_block_kernel(x_ref, mask_ref, wqkv_ref, bqkv_ref,
                            wo_ref, bo_ref, g_ref, bln_ref, o_ref,
                            *, num_heads, scale, eps):
    # Full BertSelfAttention + BertSelfOutput for one batch element.
    x = x_ref[...]
    H = wo_ref.shape[0]
    qkv = jnp.dot(x, wqkv_ref[...], preferred_element_type=jnp.float32)
    qkv = qkv + bqkv_ref[...].astype(jnp.float32)
    ctx = _mha_f32(qkv[:, :H], qkv[:, H:2 * H], qkv[:, 2 * H:],
                   mask_ref[...].astype(jnp.float32),
                   num_heads=num_heads, scale=scale)
    h = jnp.dot(ctx.astype(wo_ref.dtype), wo_ref[...],
                preferred_element_type=jnp.float32)
    h = h + bo_ref[...].astype(jnp.float32) + x.astype(jnp.float32)
    hn = _layernorm_f32(h, g_ref[...].astype(jnp.float32),
                        bln_ref[...].astype(jnp.float32), eps)
    o_ref[...] = hn.astype(o_ref.dtype)


def _dense_gelu_kernel(x_ref, w_ref, b_ref, o_ref):
    h = jnp.dot(x_ref[...], w_ref[...], preferred_element_type=jnp.float32)
    h = h + b_ref[...].astype(jnp.float32)
    g = 0.5 * h * (1.0 + _erf(h * (1.0 / math.sqrt(2.0))))
    o_ref[...] = g.astype(o_ref.dtype)


def _dense_residual_ln_kernel(x_ref, res_ref, w_ref, b_ref, g_ref, beta_ref,
                              o_ref, *, eps):
    h = jnp.dot(x_ref[...], w_ref[...], preferred_element_type=jnp.float32)
    h = h + b_ref[...].astype(jnp.float32) + res_ref[...].astype(jnp.float32)
    hn = _layernorm_f32(h, g_ref[...].astype(jnp.float32),
                        beta_ref[...].astype(jnp.float32), eps)
    o_ref[...] = hn.astype(o_ref.dtype)


# ---------------------------------------------------------------------------
# pallas_call wrappers
# ---------------------------------------------------------------------------

def cross_attention_block(att, out_p, x, ctx, mask, *, num_heads, eps):
    """BertXAttention + BertSelfOutput.  x:(B,Lq,H), ctx:(B,Lk,Hc)."""
    B, Lq, H = x.shape
    _, Lk, Hc = ctx.shape
    scale = 1.0 / math.sqrt(H // num_heads)
    wkv = jnp.concatenate([att['k_w'], att['v_w']], axis=1)
    bkv = jnp.concatenate([att['k_b'], att['v_b']], axis=0).reshape(1, 2 * H)
    mask3 = jnp.broadcast_to(mask, (B, 1, Lq, Lk))[:, 0].astype(jnp.float32)

    kernel = functools.partial(_cross_attn_block_kernel, num_heads=num_heads,
                               scale=scale, eps=eps)
    return pl.pallas_call(
        kernel,
        out_shape=jax.ShapeDtypeStruct((B, Lq, H), x.dtype),
        grid_spec=pltpu.PrefetchScalarGridSpec(
            num_scalar_prefetch=0,
            grid=(B,),
            in_specs=[
                pl.BlockSpec((None, Lq, H), lambda b: (b, 0, 0)),
                pl.BlockSpec((None, Lk, Hc), lambda b: (b, 0, 0)),
                pl.BlockSpec((None, Lq, Lk), lambda b: (b, 0, 0)),
                pl.BlockSpec((H, H), lambda b: (0, 0)),
                pl.BlockSpec((1, H), lambda b: (0, 0)),
                pl.BlockSpec((Hc, 2 * H), lambda b: (0, 0)),
                pl.BlockSpec((1, 2 * H), lambda b: (0, 0)),
                pl.BlockSpec((H, H), lambda b: (0, 0)),
                pl.BlockSpec((1, H), lambda b: (0, 0)),
                pl.BlockSpec((1, H), lambda b: (0, 0)),
                pl.BlockSpec((1, H), lambda b: (0, 0)),
            ],
            out_specs=pl.BlockSpec((None, Lq, H), lambda b: (b, 0, 0)),
        ),
        compiler_params=pltpu.CompilerParams(
            dimension_semantics=("parallel",),
            vmem_limit_bytes=_VMEM_LIMIT),
    )(x, ctx, mask3,
      att['q_w'], att['q_b'].reshape(1, H),
      wkv, bkv,
      out_p['dense_w'], out_p['dense_b'].reshape(1, H),
      out_p['ln_g'].reshape(1, H), out_p['ln_b'].reshape(1, H))


def self_attention_block(att, out_p, x, mask, *, num_heads, eps):
    """BertSelfAttention + BertSelfOutput.  x:(B,L,H)."""
    B, L, H = x.shape
    scale = 1.0 / math.sqrt(H // num_heads)
    wqkv = jnp.concatenate([att['q_w'], att['k_w'], att['v_w']], axis=1)
    bqkv = jnp.concatenate([att['q_b'], att['k_b'], att['v_b']],
                           axis=0).reshape(1, 3 * H)
    mask3 = jnp.broadcast_to(mask, (B, 1, L, L))[:, 0].astype(jnp.float32)

    kernel = functools.partial(_self_attn_block_kernel, num_heads=num_heads,
                               scale=scale, eps=eps)
    return pl.pallas_call(
        kernel,
        out_shape=jax.ShapeDtypeStruct((B, L, H), x.dtype),
        grid_spec=pltpu.PrefetchScalarGridSpec(
            num_scalar_prefetch=0,
            grid=(B,),
            in_specs=[
                pl.BlockSpec((None, L, H), lambda b: (b, 0, 0)),
                pl.BlockSpec((None, L, L), lambda b: (b, 0, 0)),
                pl.BlockSpec((H, 3 * H), lambda b: (0, 0)),
                pl.BlockSpec((1, 3 * H), lambda b: (0, 0)),
                pl.BlockSpec((H, H), lambda b: (0, 0)),
                pl.BlockSpec((1, H), lambda b: (0, 0)),
                pl.BlockSpec((1, H), lambda b: (0, 0)),
                pl.BlockSpec((1, H), lambda b: (0, 0)),
            ],
            out_specs=pl.BlockSpec((None, L, H), lambda b: (b, 0, 0)),
        ),
        compiler_params=pltpu.CompilerParams(
            dimension_semantics=("parallel",),
            vmem_limit_bytes=_VMEM_LIMIT),
    )(x, mask3,
      wqkv, bqkv,
      out_p['dense_w'], out_p['dense_b'].reshape(1, H),
      out_p['ln_g'].reshape(1, H), out_p['ln_b'].reshape(1, H))


def dense_gelu(x, w, b, *, row_tile=256):
    orig = x.shape
    hin, hout = w.shape
    x2 = x.reshape(-1, hin)
    n = x2.shape[0]
    tm, np_ = _row_grid(n, row_tile)
    x2 = _pad_rows(x2, np_)

    out = pl.pallas_call(
        _dense_gelu_kernel,
        out_shape=jax.ShapeDtypeStruct((np_, hout), x.dtype),
        grid_spec=pltpu.PrefetchScalarGridSpec(
            num_scalar_prefetch=0,
            grid=(np_ // tm,),
            in_specs=[
                pl.BlockSpec((tm, hin), lambda i: (i, 0)),
                pl.BlockSpec((hin, hout), lambda i: (0, 0)),
                pl.BlockSpec((1, hout), lambda i: (0, 0)),
            ],
            out_specs=pl.BlockSpec((tm, hout), lambda i: (i, 0)),
        ),
        compiler_params=pltpu.CompilerParams(
            dimension_semantics=("parallel",),
            vmem_limit_bytes=_VMEM_LIMIT),
    )(x2, w, b.reshape(1, hout))
    return out[:n].reshape(orig[:-1] + (hout,))


def dense_residual_layernorm(x, res, w, b, gamma, beta, *, eps=1e-12,
                             row_tile=256):
    """LayerNorm(x @ w + b + res) with LN over the last (hidden) axis."""
    orig = res.shape
    hin, hout = w.shape
    x2 = x.reshape(-1, hin)
    r2 = res.reshape(-1, hout)
    n = x2.shape[0]
    tm, np_ = _row_grid(n, row_tile)
    x2 = _pad_rows(x2, np_)
    r2 = _pad_rows(r2, np_)

    out = pl.pallas_call(
        functools.partial(_dense_residual_ln_kernel, eps=eps),
        out_shape=jax.ShapeDtypeStruct((np_, hout), res.dtype),
        grid_spec=pltpu.PrefetchScalarGridSpec(
            num_scalar_prefetch=0,
            grid=(np_ // tm,),
            in_specs=[
                pl.BlockSpec((tm, hin), lambda i: (i, 0)),
                pl.BlockSpec((tm, hout), lambda i: (i, 0)),
                pl.BlockSpec((hin, hout), lambda i: (0, 0)),
                pl.BlockSpec((1, hout), lambda i: (0, 0)),
                pl.BlockSpec((1, hout), lambda i: (0, 0)),
                pl.BlockSpec((1, hout), lambda i: (0, 0)),
            ],
            out_specs=pl.BlockSpec((tm, hout), lambda i: (i, 0)),
        ),
        compiler_params=pltpu.CompilerParams(
            dimension_semantics=("parallel",),
            vmem_limit_bytes=_VMEM_LIMIT),
    )(x2, r2, w, b.reshape(1, hout), gamma.reshape(1, hout),
      beta.reshape(1, hout))
    return out[:n].reshape(orig)


# ---------------------------------------------------------------------------
# Module composition (GraphLXRTXLayer.forward, eval mode)
# ---------------------------------------------------------------------------

def graph_lxrt_x_layer(params, lang_feats, lang_attention_mask, visn_feats,
                       visn_attention_mask, graph_sprels=None, *, num_heads,
                       eps=1e-12):
    # 1. cross attention: visn queries over lang context (+ dense/res/LN).
    va = params['visual_attention']
    visn_att_output = cross_attention_block(
        va['att'], va['output'], visn_feats, lang_feats, lang_attention_mask,
        num_heads=num_heads, eps=eps)

    # 2. optional graph spatial-relation bias on the self-attention mask.
    if graph_sprels is not None:
        visn_attention_mask = visn_attention_mask + graph_sprels

    # 3. self attention over visn (+ dense/res/LN).
    sa = params['visn_self_att']
    visn_att_output = self_attention_block(
        sa['self'], sa['output'], visn_att_output, visn_attention_mask,
        num_heads=num_heads, eps=eps)

    # 4./5. feed-forward.
    inter = dense_gelu(visn_att_output, params['visn_inter']['dense_w'],
                       params['visn_inter']['dense_b'])
    visn_output = dense_residual_layernorm(
        inter, visn_att_output, params['visn_output']['dense_w'],
        params['visn_output']['dense_b'], params['visn_output']['ln_g'],
        params['visn_output']['ln_b'], eps=eps)
    return visn_output


# ---------------------------------------------------------------------------
# Parameter init + pure-JAX reference
# ---------------------------------------------------------------------------

def init_params(key, hidden, intermediate, dtype=jnp.float32):
    keys = iter(jax.random.split(key, 24))

    def lin(fan_in, fan_out):
        bound = 1.0 / math.sqrt(fan_in)
        w = jax.random.uniform(next(keys), (fan_in, fan_out), dtype,
                               minval=-bound, maxval=bound)
        b = jax.random.uniform(next(keys), (fan_out,), dtype,
                               minval=-bound, maxval=bound)
        return w, b

    def attn_params(ctx_dim):
        qw, qb = lin(hidden, hidden)
        kw, kb = lin(ctx_dim, hidden)
        vw, vb = lin(ctx_dim, hidden)
        return {'q_w': qw, 'q_b': qb, 'k_w': kw, 'k_b': kb,
                'v_w': vw, 'v_b': vb}

    def self_output_params(in_dim):
        dw, db = lin(in_dim, hidden)
        return {'dense_w': dw, 'dense_b': db,
                'ln_g': jnp.ones((hidden,), dtype),
                'ln_b': jnp.zeros((hidden,), dtype)}

    iw, ib = lin(hidden, intermediate)
    return {
        'visual_attention': {'att': attn_params(hidden),
                             'output': self_output_params(hidden)},
        'visn_self_att': {'self': attn_params(hidden),
                          'output': self_output_params(hidden)},
        'visn_inter': {'dense_w': iw, 'dense_b': ib},
        'visn_output': self_output_params(intermediate),
    }


def _reference(params, lang_feats, lang_mask, visn_feats, visn_mask,
               graph_sprels, *, num_heads, eps=1e-12):
    def dense(x, w, b):
        return x @ w + b

    def layernorm(x, g, b):
        m = jnp.mean(x, axis=-1, keepdims=True)
        v = jnp.mean((x - m) ** 2, axis=-1, keepdims=True)
        return (x - m) / jnp.sqrt(v + eps) * g + b

    def mha(q_in, kv_in, mask, p):
        B, Lq, _ = q_in.shape
        H = p['q_w'].shape[1]
        Lk = kv_in.shape[1]
        dh = H // num_heads
        q = dense(q_in, p['q_w'], p['q_b']).reshape(
            B, Lq, num_heads, dh).transpose(0, 2, 1, 3)
        k = dense(kv_in, p['k_w'], p['k_b']).reshape(
            B, Lk, num_heads, dh).transpose(0, 2, 1, 3)
        v = dense(kv_in, p['v_w'], p['v_b']).reshape(
            B, Lk, num_heads, dh).transpose(0, 2, 1, 3)
        s = jnp.einsum('bhqd,bhkd->bhqk', q, k) / math.sqrt(dh) + mask
        a = jax.nn.softmax(s, axis=-1)
        ctx = jnp.einsum('bhqk,bhkd->bhqd', a, v)
        return ctx.transpose(0, 2, 1, 3).reshape(B, Lq, H)

    def self_output(h, inp, p):
        return layernorm(dense(h, p['dense_w'], p['dense_b']) + inp,
                         p['ln_g'], p['ln_b'])

    ctx = mha(visn_feats, lang_feats, lang_mask,
              params['visual_attention']['att'])
    visn_att = self_output(ctx, visn_feats,
                           params['visual_attention']['output'])

    vmask = visn_mask if graph_sprels is None else visn_mask + graph_sprels
    ctx = mha(visn_att, visn_att, vmask, params['visn_self_att']['self'])
    visn_att = self_output(ctx, visn_att, params['visn_self_att']['output'])

    inter = dense(visn_att, params['visn_inter']['dense_w'],
                  params['visn_inter']['dense_b'])
    inter = inter * 0.5 * (1.0 + jax.lax.erf(inter / math.sqrt(2.0)))
    return self_output(inter, visn_att, params['visn_output'])


if __name__ == "__main__":
    key = jax.random.PRNGKey(0)
    k_lang, k_visn, k_sprel, k_param = jax.random.split(key, 4)

    batch, lang_seq, visn_seq, hidden = 2, 8, 8, 32
    num_heads, intermediate = 4, 128
    dtype = jnp.float32

    lang_feats = jax.random.normal(k_lang, (batch, lang_seq, hidden), dtype)
    visn_feats = jax.random.normal(k_visn, (batch, visn_seq, hidden), dtype)

    lang_lens = jnp.array([8, 5])
    visn_lens = jnp.array([8, 6])
    lang_valid = (jnp.arange(lang_seq)[None, :] < lang_lens[:, None])
    visn_valid = (jnp.arange(visn_seq)[None, :] < visn_lens[:, None])
    lang_attention_mask = ((1.0 - lang_valid.astype(dtype))
                           * -10000.0)[:, None, None, :]
    visn_attention_mask = ((1.0 - visn_valid.astype(dtype))
                           * -10000.0)[:, None, None, :]
    graph_sprels = 0.1 * jax.random.normal(
        k_sprel, (batch, 1, visn_seq, visn_seq), dtype)

    params = init_params(k_param, hidden, intermediate, dtype)

    out = graph_lxrt_x_layer(params, lang_feats, lang_attention_mask,
                             visn_feats, visn_attention_mask, graph_sprels,
                             num_heads=num_heads)
    out = jax.block_until_ready(out)

    ref = _reference(params, lang_feats, lang_attention_mask, visn_feats,
                     visn_attention_mask, graph_sprels, num_heads=num_heads)

    assert out.shape == (batch, visn_seq, hidden), out.shape
    max_err = float(jnp.max(jnp.abs(out - ref)))
    assert jnp.allclose(out, ref, atol=1e-4, rtol=1e-4), max_err
    print("KERNEL_OK")
</pallas_src>

<mosaic_0001>
module attributes {stable_mosaic.version = 11 : i64} {
  func.func @_cross_attn_block_kernel(%arg0: i32, %arg1: memref<1x8x32xf32, #tpu.memory_space<vmem>>, %arg2: memref<1x8x32xf32, #tpu.memory_space<vmem>>, %arg3: memref<1x8x8xf32, #tpu.memory_space<vmem>>, %arg4: memref<32x32xf32, #tpu.memory_space<vmem>>, %arg5: memref<1x32xf32, #tpu.memory_space<vmem>>, %arg6: memref<32x64xf32, #tpu.memory_space<vmem>>, %arg7: memref<1x64xf32, #tpu.memory_space<vmem>>, %arg8: memref<32x32xf32, #tpu.memory_space<vmem>>, %arg9: memref<1x32xf32, #tpu.memory_space<vmem>>, %arg10: memref<1x32xf32, #tpu.memory_space<vmem>>, %arg11: memref<1x32xf32, #tpu.memory_space<vmem>>, %arg12: memref<1x8x32xf32, #tpu.memory_space<vmem>>) attributes {dimension_semantics = [#tpu.dimension_semantics<parallel>], iteration_bounds = array<i64: 2>, scalar_prefetch = 0 : i64, scratch_operands = 0 : i64, tpu.core_type = #tpu.core_type<tc>, window_params = [{transform_indices = @transform_0, window_bounds = array<i64: 1, 8, 32>}, {transform_indices = @transform_1, window_bounds = array<i64: 1, 8, 32>}, {transform_indices = @transform_2, window_bounds = array<i64: 1, 8, 8>}, {pipeline_mode = #tpu.pipeline_mode<synchronous>, transform_indices = @transform_3, window_bounds = array<i64: 32, 32>}, {pipeline_mode = #tpu.pipeline_mode<synchronous>, transform_indices = @transform_4, window_bounds = array<i64: 1, 32>}, {pipeline_mode = #tpu.pipeline_mode<synchronous>, transform_indices = @transform_5, window_bounds = array<i64: 32, 64>}, {pipeline_mode = #tpu.pipeline_mode<synchronous>, transform_indices = @transform_6, window_bounds = array<i64: 1, 64>}, {pipeline_mode = #tpu.pipeline_mode<synchronous>, transform_indices = @transform_7, window_bounds = array<i64: 32, 32>}, {pipeline_mode = #tpu.pipeline_mode<synchronous>, transform_indices = @transform_8, window_bounds = array<i64: 1, 32>}, {pipeline_mode = #tpu.pipeline_mode<synchronous>, transform_indices = @transform_9, window_bounds = array<i64: 1, 32>}, {pipeline_mode = #tpu.pipeline_mode<synchronous>, transform_indices = @transform_10, window_bounds = array<i64: 1, 32>}, {transform_indices = @transform_11, window_bounds = array<i64: 1, 8, 32>}]} {
    %c0 = arith.constant 0 : index
    %c0_0 = arith.constant 0 : index
    %c0_1 = arith.constant 0 : index
    %0 = vector.load %arg1[%c0, %c0_0, %c0_1] : memref<1x8x32xf32, #tpu.memory_space<vmem>>, vector<1x8x32xf32>
    %1 = vector.shape_cast %0 : vector<1x8x32xf32> to vector<8x32xf32>
    %c0_2 = arith.constant 0 : index
    %c0_3 = arith.constant 0 : index
    %2 = vector.load %arg4[%c0_2, %c0_3] : memref<32x32xf32, #tpu.memory_space<vmem>>, vector<32x32xf32>
    %cst = arith.constant dense<0.000000e+00> : vector<8x32xf32>
    %3 = tpu.matmul %1, %2, %cst {dimension_numbers = #tpu.dot_dimension_numbers<[1], [0], [0], [1], [0, 0, 1, 1], [], []>} : vector<8x32xf32>, vector<32x32xf32>, vector<8x32xf32> -> vector<8x32xf32>
    %c0_4 = arith.constant 0 : index
    %c0_5 = arith.constant 0 : index
    %4 = vector.load %arg5[%c0_4, %c0_5] : memref<1x32xf32, #tpu.memory_space<vmem>>, vector<1x32xf32>
    %5 = vector.broadcast %4 : vector<1x32xf32> to vector<8x32xf32>
    %6 = arith.addf %3, %5 : vector<8x32xf32>
    %c0_6 = arith.constant 0 : index
    %c0_7 = arith.constant 0 : index
    %c0_8 = arith.constant 0 : index
    %7 = vector.load %arg2[%c0_6, %c0_7, %c0_8] : memref<1x8x32xf32, #tpu.memory_space<vmem>>, vector<1x8x32xf32>
    %8 = vector.shape_cast %7 : vector<1x8x32xf32> to vector<8x32xf32>
    %c0_9 = arith.constant 0 : index
    %c0_10 = arith.constant 0 : index
    %9 = vector.load %arg6[%c0_9, %c0_10] : memref<32x64xf32, #tpu.memory_space<vmem>>, vector<32x64xf32>
    %cst_11 = arith.constant dense<0.000000e+00> : vector<8x64xf32>
    %10 = tpu.matmul %8, %9, %cst_11 {dimension_numbers = #tpu.dot_dimension_numbers<[1], [0], [0], [1], [0, 0, 1, 1], [], []>} : vector<8x32xf32>, vector<32x64xf32>, vector<8x64xf32> -> vector<8x64xf32>
    %c0_12 = arith.constant 0 : index
    %c0_13 = arith.constant 0 : index
    %11 = vector.load %arg7[%c0_12, %c0_13] : memref<1x64xf32, #tpu.memory_space<vmem>>, vector<1x64xf32>
    %12 = vector.broadcast %11 : vector<1x64xf32> to vector<8x64xf32>
    %13 = arith.addf %10, %12 : vector<8x64xf32>
    %14 = vector.extract_strided_slice %13 {offsets = [0, 0], sizes = [8, 32], strides = [1, 1]} : vector<8x64xf32> to vector<8x32xf32>
    %15 = vector.extract_strided_slice %13 {offsets = [0, 32], sizes = [8, 32], strides = [1, 1]} : vector<8x64xf32> to vector<8x32xf32>
    %c0_14 = arith.constant 0 : index
    %c0_15 = arith.constant 0 : index
    %c0_16 = arith.constant 0 : index
    %16 = vector.load %arg3[%c0_14, %c0_15, %c0_16] : memref<1x8x8xf32, #tpu.memory_space<vmem>>, vector<1x8x8xf32>
    %17 = vector.shape_cast %16 : vector<1x8x8xf32> to vector<8x8xf32>
    %18 = vector.extract_strided_slice %6 {offsets = [0, 0], sizes = [8, 8], strides = [1, 1]} : vector<8x32xf32> to vector<8x8xf32>
    %19 = vector.extract_strided_slice %14 {offsets = [0, 0], sizes = [8, 8], strides = [1, 1]} : vector<8x32xf32> to vector<8x8xf32>
    %cst_17 = arith.constant dense<0.000000e+00> : vector<8x8xf32>
    %20 = tpu.matmul %18, %19, %cst_17 {dimension_numbers = #tpu.dot_dimension_numbers<[1], [1], [0], [0], [0, 0, 1, 0], [], []>} : vector<8x8xf32>, vector<8x8xf32>, vector<8x8xf32> -> vector<8x8xf32>
    %cst_18 = arith.constant 0.353553385 : f32
    %21 = vector.broadcast %cst_18 : f32 to vector<8x8xf32>
    %22 = arith.mulf %20, %21 : vector<8x8xf32>
    %23 = arith.addf %22, %17 : vector<8x8xf32>
    %cst_19 = arith.constant dense<0xFF800000> : vector<8xf32>
    %24 = vector.multi_reduction <maximumf>, %23, %cst_19 [1] : vector<8x8xf32> to vector<8xf32>
    %25 = vector.shape_cast %24 : vector<8xf32> to vector<8x1xf32>
    %26 = vector.broadcast %25 : vector<8x1xf32> to vector<8x8xf32>
    %27 = arith.subf %23, %26 : vector<8x8xf32>
    %28 = math.exp %27 : vector<8x8xf32>
    %cst_20 = arith.constant dense<0.000000e+00> : vector<8xf32>
    %29 = vector.multi_reduction <add>, %28, %cst_20 [1] : vector<8x8xf32> to vector<8xf32>
    %30 = vector.shape_cast %29 : vector<8xf32> to vector<8x1xf32>
    %31 = vector.broadcast %30 : vector<8x1xf32> to vector<8x8xf32>
    %32 = arith.divf %28, %31 : vector<8x8xf32>
    %33 = vector.extract_strided_slice %15 {offsets = [0, 0], sizes = [8, 8], strides = [1, 1]} : vector<8x32xf32> to vector<8x8xf32>
    %cst_21 = arith.constant dense<0.000000e+00> : vector<8x8xf32>
    %34 = tpu.matmul %32, %33, %cst_21 {dimension_numbers = #tpu.dot_dimension_numbers<[1], [0], [0], [1], [0, 0, 1, 1], [], []>} : vector<8x8xf32>, vector<8x8xf32>, vector<8x8xf32> -> vector<8x8xf32>
    %35 = vector.extract_strided_slice %6 {offsets = [0, 8], sizes = [8, 8], strides = [1, 1]} : vector<8x32xf32> to vector<8x8xf32>
    %36 = vector.extract_strided_slice %14 {offsets = [0, 8], sizes = [8, 8], strides = [1, 1]} : vector<8x32xf32> to vector<8x8xf32>
    %cst_22 = arith.constant dense<0.000000e+00> : vector<8x8xf32>
    %37 = tpu.matmul %35, %36, %cst_22 {dimension_numbers = #tpu.dot_dimension_numbers<[1], [1], [0], [0], [0, 0, 1, 0], [], []>} : vector<8x8xf32>, vector<8x8xf32>, vector<8x8xf32> -> vector<8x8xf32>
    %cst_23 = arith.constant 0.353553385 : f32
    %38 = vector.broadcast %cst_23 : f32 to vector<8x8xf32>
    %39 = arith.mulf %37, %38 : vector<8x8xf32>
    %40 = arith.addf %39, %17 : vector<8x8xf32>
    %cst_24 = arith.constant dense<0xFF800000> : vector<8xf32>
    %41 = vector.multi_reduction <maximumf>, %40, %cst_24 [1] : vector<8x8xf32> to vector<8xf32>
    %42 = vector.shape_cast %41 : vector<8xf32> to vector<8x1xf32>
    %43 = vector.broadcast %42 : vector<8x1xf32> to vector<8x8xf32>
    %44 = arith.subf %40, %43 : vector<8x8xf32>
    %45 = math.exp %44 : vector<8x8xf32>
    %cst_25 = arith.constant dense<0.000000e+00> : vector<8xf32>
    %46 = vector.multi_reduction <add>, %45, %cst_25 [1] : vector<8x8xf32> to vector<8xf32>
    %47 = vector.shape_cast %46 : vector<8xf32> to vector<8x1xf32>
    %48 = vector.broadcast %47 : vector<8x1xf32> to vector<8x8xf32>
    %49 = arith.divf %45, %48 : vector<8x8xf32>
    %50 = vector.extract_strided_slice %15 {offsets = [0, 8], sizes = [8, 8], strides = [1, 1]} : vector<8x32xf32> to vector<8x8xf32>
    %cst_26 = arith.constant dense<0.000000e+00> : vector<8x8xf32>
    %51 = tpu.matmul %49, %50, %cst_26 {dimension_numbers = #tpu.dot_dimension_numbers<[1], [0], [0], [1], [0, 0, 1, 1], [], []>} : vector<8x8xf32>, vector<8x8xf32>, vector<8x8xf32> -> vector<8x8xf32>
    %52 = vector.extract_strided_slice %6 {offsets = [0, 16], sizes = [8, 8], strides = [1, 1]} : vector<8x32xf32> to vector<8x8xf32>
    %53 = vector.extract_strided_slice %14 {offsets = [0, 16], sizes = [8, 8], strides = [1, 1]} : vector<8x32xf32> to vector<8x8xf32>
    %cst_27 = arith.constant dense<0.000000e+00> : vector<8x8xf32>
    %54 = tpu.matmul %52, %53, %cst_27 {dimension_numbers = #tpu.dot_dimension_numbers<[1], [1], [0], [0], [0, 0, 1, 0], [], []>} : vector<8x8xf32>, vector<8x8xf32>, vector<8x8xf32> -> vector<8x8xf32>
    %cst_28 = arith.constant 0.353553385 : f32
    %55 = vector.broadcast %cst_28 : f32 to vector<8x8xf32>
    %56 = arith.mulf %54, %55 : vector<8x8xf32>
    %57 = arith.addf %56, %17 : vector<8x8xf32>
    %cst_29 = arith.constant dense<0xFF800000> : vector<8xf32>
    %58 = vector.multi_reduction <maximumf>, %57, %cst_29 [1] : vector<8x8xf32> to vector<8xf32>
    %59 = vector.shape_cast %58 : vector<8xf32> to vector<8x1xf32>
    %60 = vector.broadcast %59 : vector<8x1xf32> to vector<8x8xf32>
    %61 = arith.subf %57, %60 : vector<8x8xf32>
    %62 = math.exp %61 : vector<8x8xf32>
    %cst_30 = arith.constant dense<0.000000e+00> : vector<8xf32>
    %63 = vector.multi_reduction <add>, %62, %cst_30 [1] : vector<8x8xf32> to vector<8xf32>
    %64 = vector.shape_cast %63 : vector<8xf32> to vector<8x1xf32>
    %65 = vector.broadcast %64 : vector<8x1xf32> to vector<8x8xf32>
    %66 = arith.divf %62, %65 : vector<8x8xf32>
    %67 = vector.extract_strided_slice %15 {offsets = [0, 16], sizes = [8, 8], strides = [1, 1]} : vector<8x32xf32> to vector<8x8xf32>
    %cst_31 = arith.constant dense<0.000000e+00> : vector<8x8xf32>
    %68 = tpu.matmul %66, %67, %cst_31 {dimension_numbers = #tpu.dot_dimension_numbers<[1], [0], [0], [1], [0, 0, 1, 1], [], []>} : vector<8x8xf32>, vector<8x8xf32>, vector<8x8xf32> -> vector<8x8xf32>
    %69 = vector.extract_strided_slice %6 {offsets = [0, 24], sizes = [8, 8], strides = [1, 1]} : vector<8x32xf32> to vector<8x8xf32>
    %70 = vector.extract_strided_slice %14 {offsets = [0, 24], sizes = [8, 8], strides = [1, 1]} : vector<8x32xf32> to vector<8x8xf32>
    %cst_32 = arith.constant dense<0.000000e+00> : vector<8x8xf32>
    %71 = tpu.matmul %69, %70, %cst_32 {dimension_numbers = #tpu.dot_dimension_numbers<[1], [1], [0], [0], [0, 0, 1, 0], [], []>} : vector<8x8xf32>, vector<8x8xf32>, vector<8x8xf32> -> vector<8x8xf32>
    %cst_33 = arith.constant 0.353553385 : f32
    %72 = vector.broadcast %cst_33 : f32 to vector<8x8xf32>
    %73 = arith.mulf %71, %72 : vector<8x8xf32>
    %74 = arith.addf %73, %17 : vector<8x8xf32>
    %cst_34 = arith.constant dense<0xFF800000> : vector<8xf32>
    %75 = vector.multi_reduction <maximumf>, %74, %cst_34 [1] : vector<8x8xf32> to vector<8xf32>
    %76 = vector.shape_cast %75 : vector<8xf32> to vector<8x1xf32>
    %77 = vector.broadcast %76 : vector<8x1xf32> to vector<8x8xf32>
    %78 = arith.subf %74, %77 : vector<8x8xf32>
    %79 = math.exp %78 : vector<8x8xf32>
    %cst_35 = arith.constant dense<0.000000e+00> : vector<8xf32>
    %80 = vector.multi_reduction <add>, %79, %cst_35 [1] : vector<8x8xf32> to vector<8xf32>
    %81 = vector.shape_cast %80 : vector<8xf32> to vector<8x1xf32>
    %82 = vector.broadcast %81 : vector<8x1xf32> to vector<8x8xf32>
    %83 = arith.divf %79, %82 : vector<8x8xf32>
    %84 = vector.extract_strided_slice %15 {offsets = [0, 24], sizes = [8, 8], strides = [1, 1]} : vector<8x32xf32> to vector<8x8xf32>
    %cst_36 = arith.constant dense<0.000000e+00> : vector<8x8xf32>
    %85 = tpu.matmul %83, %84, %cst_36 {dimension_numbers = #tpu.dot_dimension_numbers<[1], [0], [0], [1], [0, 0, 1, 1], [], []>} : vector<8x8xf32>, vector<8x8xf32>, vector<8x8xf32> -> vector<8x8xf32>
    %86 = tpu.concatenate %34, %51, %68, %85 in 1 : vector<8x8xf32>, vector<8x8xf32>, vector<8x8xf32>, vector<8x8xf32> -> vector<8x32xf32>
    %c0_37 = arith.constant 0 : index
    %c0_38 = arith.constant 0 : index
    %87 = vector.load %arg8[%c0_37, %c0_38] : memref<32x32xf32, #tpu.memory_space<vmem>>, vector<32x32xf32>
    %cst_39 = arith.constant dense<0.000000e+00> : vector<8x32xf32>
    %88 = tpu.matmul %86, %87, %cst_39 {dimension_numbers = #tpu.dot_dimension_numbers<[1], [0], [0], [1], [0, 0, 1, 1], [], []>} : vector<8x32xf32>, vector<32x32xf32>, vector<8x32xf32> -> vector<8x32xf32>
    %c0_40 = arith.constant 0 : index
    %c0_41 = arith.constant 0 : index
    %89 = vector.load %arg9[%c0_40, %c0_41] : memref<1x32xf32, #tpu.memory_space<vmem>>, vector<1x32xf32>
    %90 = vector.broadcast %89 : vector<1x32xf32> to vector<8x32xf32>
    %91 = arith.addf %88, %90 : vector<8x32xf32>
    %92 = arith.addf %91, %1 : vector<8x32xf32>
    %c0_42 = arith.constant 0 : index
    %c0_43 = arith.constant 0 : index
    %93 = vector.load %arg10[%c0_42, %c0_43] : memref<1x32xf32, #tpu.memory_space<vmem>>, vector<1x32xf32>
    %c0_44 = arith.constant 0 : index
    %c0_45 = arith.constant 0 : index
    %94 = vector.load %arg11[%c0_44, %c0_45] : memref<1x32xf32, #tpu.memory_space<vmem>>, vector<1x32xf32>
    %cst_46 = arith.constant dense<0.000000e+00> : vector<8xf32>
    %95 = vector.multi_reduction <add>, %92, %cst_46 [1] : vector<8x32xf32> to vector<8xf32>
    %96 = vector.shape_cast %95 : vector<8xf32> to vector<8x1xf32>
    %cst_47 = arith.constant 3.200000e+01 : f32
    %97 = vector.broadcast %cst_47 : f32 to vector<8x1xf32>
    %98 = arith.divf %96, %97 : vector<8x1xf32>
    %99 = vector.broadcast %98 : vector<8x1xf32> to vector<8x32xf32>
    %100 = arith.subf %92, %99 : vector<8x32xf32>
    %101 = arith.mulf %100, %100 : vector<8x32xf32>
    %cst_48 = arith.constant dense<0.000000e+00> : vector<8xf32>
    %102 = vector.multi_reduction <add>, %101, %cst_48 [1] : vector<8x32xf32> to vector<8xf32>
    %103 = vector.shape_cast %102 : vector<8xf32> to vector<8x1xf32>
    %cst_49 = arith.constant 3.200000e+01 : f32
    %104 = vector.broadcast %cst_49 : f32 to vector<8x1xf32>
    %105 = arith.divf %103, %104 : vector<8x1xf32>
    %cst_50 = arith.constant 9.99999996E-13 : f32
    %106 = vector.broadcast %cst_50 : f32 to vector<8x1xf32>
    %107 = arith.addf %105, %106 : vector<8x1xf32>
    %108 = math.rsqrt %107 : vector<8x1xf32>
    %109 = vector.broadcast %108 : vector<8x1xf32> to vector<8x32xf32>
    %110 = arith.mulf %100, %109 : vector<8x32xf32>
    %111 = vector.broadcast %93 : vector<1x32xf32> to vector<8x32xf32>
    %112 = arith.mulf %110, %111 : vector<8x32xf32>
    %113 = vector.broadcast %94 : vector<1x32xf32> to vector<8x32xf32>
    %114 = arith.addf %112, %113 : vector<8x32xf32>
    %c0_51 = arith.constant 0 : index
    %c0_52 = arith.constant 0 : index
    %c0_53 = arith.constant 0 : index
    %115 = vector.load %arg12[%c0_51, %c0_52, %c0_53] : memref<1x8x32xf32, #tpu.memory_space<vmem>>, vector<1x8x32xf32>
    %116 = vector.shape_cast %115 : vector<1x8x32xf32> to vector<8x32xf32>
    %117 = vector.shape_cast %114 : vector<8x32xf32> to vector<1x8x32xf32>
    tpu.vector_store %arg12[%c0_51, %c0_52, %c0_53], %117 {strides = array<i32>} : memref<1x8x32xf32, #tpu.memory_space<vmem>>, vector<1x8x32xf32>,
    return
  }
  func.func @transform_0(%arg0: i32) -> (i32, i32, i32) {
    %c0_i32 = arith.constant 0 : i32
    %c0_i32_0 = arith.constant 0 : i32
    %c0_i32_1 = arith.constant 0 : i32
    return %arg0, %c0_i32, %c0_i32_0 : i32, i32, i32
  }
  func.func @transform_1(%arg0: i32) -> (i32, i32, i32) {
    %c0_i32 = arith.constant 0 : i32
    %c0_i32_0 = arith.constant 0 : i32
    %c0_i32_1 = arith.constant 0 : i32
    return %arg0, %c0_i32, %c0_i32_0 : i32, i32, i32
  }
  func.func @transform_2(%arg0: i32) -> (i32, i32, i32) {
    %c0_i32 = arith.constant 0 : i32
    %c0_i32_0 = arith.constant 0 : i32
    %c0_i32_1 = arith.constant 0 : i32
    return %arg0, %c0_i32, %c0_i32_0 : i32, i32, i32
  }
  func.func @transform_3(%arg0: i32) -> (i32, i32) {
    %c0_i32 = arith.constant 0 : i32
    %c0_i32_0 = arith.constant 0 : i32
    %c0_i32_1 = arith.constant 0 : i32
    return %c0_i32, %c0_i32_0 : i32, i32
  }
  func.func @transform_4(%arg0: i32) -> (i32, i32) {
    %c0_i32 = arith.constant 0 : i32
    %c0_i32_0 = arith.constant 0 : i32
    %c0_i32_1 = arith.constant 0 : i32
    return %c0_i32, %c0_i32_0 : i32, i32
  }
  func.func @transform_5(%arg0: i32) -> (i32, i32) {
    %c0_i32 = arith.constant 0 : i32
    %c0_i32_0 = arith.constant 0 : i32
    %c0_i32_1 = arith.constant 0 : i32
    return %c0_i32, %c0_i32_0 : i32, i32
  }
  func.func @transform_6(%arg0: i32) -> (i32, i32) {
    %c0_i32 = arith.constant 0 : i32
    %c0_i32_0 = arith.constant 0 : i32
    %c0_i32_1 = arith.constant 0 : i32
    return %c0_i32, %c0_i32_0 : i32, i32
  }
  func.func @transform_7(%arg0: i32) -> (i32, i32) {
    %c0_i32 = arith.constant 0 : i32
    %c0_i32_0 = arith.constant 0 : i32
    %c0_i32_1 = arith.constant 0 : i32
    return %c0_i32, %c0_i32_0 : i32, i32
  }
  func.func @transform_8(%arg0: i32) -> (i32, i32) {
    %c0_i32 = arith.constant 0 : i32
    %c0_i32_0 = arith.constant 0 : i32
    %c0_i32_1 = arith.constant 0 : i32
    return %c0_i32, %c0_i32_0 : i32, i32
  }
  func.func @transform_9(%arg0: i32) -> (i32, i32) {
    %c0_i32 = arith.constant 0 : i32
    %c0_i32_0 = arith.constant 0 : i32
    %c0_i32_1 = arith.constant 0 : i32
    return %c0_i32, %c0_i32_0 : i32, i32
  }
  func.func @transform_10(%arg0: i32) -> (i32, i32) {
    %c0_i32 = arith.constant 0 : i32
    %c0_i32_0 = arith.constant 0 : i32
    %c0_i32_1 = arith.constant 0 : i32
    return %c0_i32, %c0_i32_0 : i32, i32
  }
  func.func @transform_11(%arg0: i32) -> (i32, i32, i32) {
    %c0_i32 = arith.constant 0 : i32
    %c0_i32_0 = arith.constant 0 : i32
    %c0_i32_1 = arith.constant 0 : i32
    return %arg0, %c0_i32, %c0_i32_0 : i32, i32, i32
  }
}

</mosaic_0001>

<bundles_post_ra>
// kernel: tpu_custom_call.1
= control target key start
LH: loop header
LB: loop body
LE: loop exit
PB: predicated region body
PF: predicated region fallthrough
CT: control target
= control target key end

     0   :  { %s3114_s0 = inlined_call_operand.hbm [shape: f32[2,8,32], index: 0, kind: input, shape index: {}]   ;;  %s3115_s1 = inlined_call_operand.hbm [shape: f32[2,8,32], index: 1, kind: input, shape index: {}]   ;;  %s3116_s2 = inlined_call_operand.hbm [shape: f32[2,8,8], index: 2, kind: input, shape index: {}]   ;;  %s3117_s3 = inlined_call_operand.hbm [shape: f32[32,32], index: 3, kind: input, shape index: {}]   ;;  %s3118_s4 = inlined_call_operand.hbm [shape: f32[1,32], index: 4, kind: input, shape index: {}]   ;;  %s3119_s5 = inlined_call_operand.hbm [shape: f32[32,64], index: 5, kind: input, shape index: {}]   ;;  %s3120_s6 = inlined_call_operand.hbm [shape: f32[1,64], index: 6, kind: input, shape index: {}]   ;;  %s3121_s7 = inlined_call_operand.hbm [shape: f32[32,32], index: 7, kind: input, shape index: {}]   ;;  %s3122_s8 = inlined_call_operand.hbm [shape: f32[1,32], index: 8, kind: input, shape index: {}]   ;;  %s3123_s9 = inlined_call_operand.hbm [shape: f32[1,32], index: 9, kind: input, shape index: {}]   ;;  %s3124_s10 = inlined_call_operand.hbm [shape: f32[1,32], index: 10, kind: input, shape index: {}]   ;;  %s3125_s11 = inlined_call_operand.hbm [shape: f32[2,8,32], index: 11, kind: output, shape index: {}]  }
   0x1   :  { %3146 = sst [smem:[#allocation33_spill]] %s3115_s1 }
   0x2   :  { %3147 = sst [smem:[#allocation34_spill]] %s3116_s2 }
   0x3   :  { %3148 = sst [smem:[#allocation35_spill]] %s3117_s3 }
   0x4   :  { %3149 = sst [smem:[#allocation36_spill]] %s3119_s5 }
   0x5   :  { %3150 = sst [smem:[#allocation37_spill]] %s3121_s7 }
   0x6   :  { %3151 = sst [smem:[#allocation38_spill]] %s3123_s9 }
   0x7   :  { %3152 = sst [smem:[#allocation39_spill]] %s3125_s11 }
   0x8   :  { %16 = vsyncpa [#allocation3], 0 }
   0x9   :  { %18 = vsyncpa [#allocation3 + $0x1], 0 }
   0xa   :  { %19 = vsyncpa [#allocation6], 0 }
   0xb   :  { %21 = vsyncpa [#allocation6 + $0x1], 0 }
   0xc   :  { %22 = vsyncpa [#allocation9], 0 }
   0xd   :  { %23 = vsyncpa [#allocation12], 0 }
   0xe   :  { %24 = vsyncpa [#allocation15], 0 }
   0xf   :  { %25 = vsyncpa [#allocation18], 0 }
  0x10   :  { %26 = vsyncpa [#allocation4], 0 }
  0x11   :  { %28 = vsyncpa [#allocation4 + $0x1], 0  ;;  %s2589_s17 = smov 0   ;;  %s2591_s18 = smov 0  }
  0x12   :  { %s2593_s19 = smov 0   ;;  %s2595_s20 = smov 0  }
  0x13 LB: > { %3153 = sst [smem:[#allocation28_spill]] %s2500_s20  ;;  %s2502_s21 = smov [#allocation8]   ;;  %s2500_s20 = sphi %s2595_s20, %s3196_s20   ;;  %s2496_s19 = sphi %s2593_s19, %s3200_s19   ;;  %s2492_s18 = sphi %s2591_s18, %s3199_s18   ;;  %s2488_s17 = sphi %s2589_s17, %s3198_s17  }
  0x14   : > { %s323_s22 = sshll.u32 %s2502_s21, 4  ;;  %s2610_s23 = sadd.s32 4294967295, %s2500_s20   ;;  %s2615_s22 = int_to_ptr.vmem [resolvable:$true] %s323_s22 }
  0x15   : > { %p1755_p0 = scmp.ge.s32.totalorder %s2500_s20, 1  ;;  %p3129_p1 = scmp.eq.s32.totalorder %s2610_s23, 0 }
  0x16   : > { %p311_p2 = scmp.lt.s32.totalorder %s2500_s20, 3  ;;  %s2503_s25 = smov [#allocation11]  }
  0x17   : > { %s347_s26 = sshll.u32 %s2503_s25, 4  ;;  %s2504_s28 = smov [#allocation14]   ;;  %s2630_s26 = int_to_ptr.vmem [resolvable:$true] %s347_s26 }
  0x18   : > { %p2617_p3 = pnand %p1755_p0, %p311_p2  ;;  %s371_s29 = sshll.u32 %s2504_s28, 4  ;;  %s2632_s29 = int_to_ptr.vmem [resolvable:$true] %s371_s29 }
  0x19   : > { %s3157_s3 = sld [smem:[#allocation35_spill]] }
  0x1a   : > { %s3154_s24 = scalar_select %p2617_p3, 1, 0 }
  0x1b   : > { %p1970_p5 = pneg %p2617_p3 }
  0x1c   : > { %3155 = sst [smem:[#allocation29_spill]] %s3154_s24 }
  0x1d   : > { %p2626_p6 = pnand %p1970_p5, %p3129_p1 }
  0x1f   : > { %s3156_s27 = scalar_select %p2626_p6, 1, 0 }
  0x20   : > { %s2100_s13 = scalar_lea.hbm %s3157_s3, 512  ;;  %p2642_p8 = pneg %p2626_p6 }
  0x21   : > { %p2101_p7 = scmp.ne.s32.totalorder %s3157_s3, %s2100_s13  ;;  %p2107_p11 = scmp.lt.u32.totalorder %s2100_s13, %s3157_s3 }
  0x22   : > { %s3158_s16 = scalar_select %p2642_p8, 1, 0 }
  0x23   : > { %p2103_p9 = pnand %p2642_p8, %p2101_p7 }
  0x25   : > { %p2104_p10 = pneg %p2103_p9 }
  0x27   : > { %p2109_p12 = pnand %p2107_p11, %p2104_p10 }
  0x29   : > { %2112 = shalt.err (!%p2109_p12)
}
  0x2a   : > { %s2113_s28 = scalar_lea.vmem %s2615_s22, 512  ;;  %p2121_p5 = scmp.lt.s32.totalorder %s2615_s22, %s2615_s22 }
  0x2b   : > { %p2114_p13 = scmp.ne.s32.totalorder %s2615_s22, %s2113_s28  ;;  %p2122_p4 = scmp.lt.s32.totalorder %s2113_s28, %s2113_s28 }
  0x2d   : > { %p2116_p0 = pnand %p2114_p13, %p2642_p8  ;;  %p2123_p7 = por %p2122_p4, %p2121_p5 }
  0x2f   : > { %p2117_p2 = pneg %p2116_p0 }
  0x31   : > { %p2124_p9 = pnand %p2123_p7, %p2117_p2 }
  0x33   : > { %2127 = shalt.err (!%p2124_p9)
}
  0x34   : > { %s2505_s30 = smov 128   ;;  %s2506_s12 = smov 8  }
  0x35   : > { %1973 = dma.hbm_to_vmem [thread:$0]  (!%p2626_p6), %s3157_s3, 512, %s2615_s22, [#allocation9], %s2505_s30, %s2505_s30, %s2506_s12  }
  0x36   : > { %s3159_s5 = sld [smem:[#allocation36_spill]] }
  0x3c   : > { %s2128_s25 = scalar_lea.hbm %s3159_s5, 512 }
  0x3d   : > { %p2129_p4 = scmp.ne.s32.totalorder %s3159_s5, %s2128_s25  ;;  %p2135_p12 = scmp.lt.u32.totalorder %s2128_s25, %s3159_s5 }
  0x3f   : > { %p2131_p10 = pnand %p2129_p4, %p2642_p8 }
  0x41   : > { %p2132_p11 = pneg %p2131_p10 }
  0x43   : > { %p2137_p13 = pnand %p2135_p12, %p2132_p11 }
  0x45   : > { %2140 = shalt.err (!%p2137_p13)
}
  0x46   : > { %s2141_s22 = scalar_lea.vmem %s2630_s26, 512  ;;  %p2149_p7 = scmp.lt.s32.totalorder %s2630_s26, %s2630_s26 }
  0x47   : > { %p2142_p0 = scmp.ne.s32.totalorder %s2630_s26, %s2141_s22  ;;  %p2150_p9 = scmp.lt.s32.totalorder %s2141_s22, %s2141_s22 }
  0x49   : > { %p2144_p2 = pnand %p2142_p0, %p2642_p8  ;;  %p2151_p4 = por %p2150_p9, %p2149_p7 }
  0x4b   : > { %p2145_p5 = pneg %p2144_p2 }
  0x4d   : > { %p2152_p10 = pnand %p2151_p4, %p2145_p5 }
  0x4f   : > { %2155 = shalt.err (!%p2152_p10)
}
  0x50   : > { %1979 = dma.hbm_to_vmem [thread:$0]  (!%p2626_p6), %s3159_s5, 512, %s2630_s26, [#allocation12], %s2505_s30, %s2505_s30, %s2506_s12  }
  0x51   : > { %s3160_s7 = sld [smem:[#allocation37_spill]] }
  0x57   : > { %s2156_s14 = scalar_lea.hbm %s3160_s7, 512 }
  0x58   : > { %p2157_p11 = scmp.ne.s32.totalorder %s3160_s7, %s2156_s14  ;;  %p2163_p0 = scmp.lt.u32.totalorder %s2156_s14, %s3160_s7 }
  0x5a   : > { %p2159_p12 = pnand %p2157_p11, %p2642_p8 }
  0x5c   : > { %p2160_p13 = pneg %p2159_p12 }
  0x5e   : > { %p2165_p2 = pnand %p2163_p0, %p2160_p13 }
  0x60   : > { %2168 = shalt.err (!%p2165_p2)
}
  0x61   : > { %s2169_s26 = scalar_lea.vmem %s2632_s29, 512  ;;  %p2177_p4 = scmp.lt.s32.totalorder %s2632_s29, %s2632_s29 }
  0x62   : > { %p2170_p5 = scmp.ne.s32.totalorder %s2632_s29, %s2169_s26  ;;  %p2178_p10 = scmp.lt.s32.totalorder %s2169_s26, %s2169_s26 }
  0x64   : > { %p2172_p7 = pnand %p2170_p5, %p2642_p8  ;;  %p2179_p11 = por %p2178_p10, %p2177_p4 }
  0x66   : > { %p2173_p9 = pneg %p2172_p7 }
  0x68   : > { %p2180_p12 = pnand %p2179_p11, %p2173_p9 }
  0x6a   : > { %2183 = shalt.err (!%p2180_p12)
}
  0x6b   : > { %1985 = dma.hbm_to_vmem [thread:$0]  (!%p2626_p6), %s3160_s7, 512, %s2632_s29, [#allocation15], %s2505_s30, %s2505_s30, %s2506_s12  }
  0x6c   : > { %s2507_s11 = smov [#allocation17]   ;;  %s3161_s9 = sld [smem:[#allocation38_spill]] }
  0x6d   : > { %s396_s24 = sshll.u32 %s2507_s11, 4  ;;  %s397_s24 = int_to_ptr.vmem [resolvable:$true] %s396_s24 }
  0x72   : > { %s2184_s15 = scalar_lea.hbm %s3161_s9, 16 }
  0x73   : > { %p2185_p13 = scmp.ne.s32.totalorder %s3161_s9, %s2184_s15  ;;  %p2191_p5 = scmp.lt.u32.totalorder %s2184_s15, %s3161_s9 }
  0x75   : > { %p2187_p0 = pnand %p2185_p13, %p2642_p8 }
  0x77   : > { %p2188_p2 = pneg %p2187_p0 }
  0x79   : > { %p2193_p7 = pnand %p2191_p5, %p2188_p2 }
  0x7b   : > { %2196 = shalt.err (!%p2193_p7)
}
  0x7c   : > { %s2197_s29 = scalar_lea.vmem %s397_s24, 16  ;;  %s2204_s30 = scalar_lea.vmem %s397_s24, 32 }
  0x7d   : > { %p2198_p9 = scmp.ne.s32.totalorder %s397_s24, %s2197_s29  ;;  %p2205_p11 = scmp.lt.s32.totalorder %s397_s24, %s397_s24 }
  0x7e   : > { %p2206_p12 = scmp.lt.s32.totalorder %s2204_s30, %s2197_s29 }
  0x7f   : > { %p2200_p4 = pnand %p2198_p9, %p2642_p8 }
  0x80   : > { %p2207_p1 = por %p2206_p12, %p2205_p11 }
  0x81   : > { %p2201_p10 = pneg %p2200_p4 }
  0x83   : > { %p2208_p3 = pnand %p2207_p1, %p2201_p10 }
  0x85   : > { %2211 = shalt.err (!%p2208_p3)
}
  0x86   : > { %1991 = dma.hbm_to_vmem [thread:$0]  (!%p2626_p6), %s3161_s9, 16, %s397_s24, [#allocation18]  }
  0x87   : > { %s1754_s2 = sadd.s32 4294967294, %s2500_s20   ;;  %s2738_s11 = sadd.s32 1, %s2500_s20  }
  0x88   : > { %3162 = sst [smem:[#allocation30_spill]] %s2738_s11  ;;  %s38_s13 = ssub.s32 %s2500_s20, %s2738_s11 }
  0x89   : > { %s41_s14 = sadd.s32 1, %s2496_s19  ;;  %p39_p1 = scmp.eq.s32.totalorder %s38_s13, 0 }
  0x8a   : > { %p48_p3 = scmp.ne.s32.totalorder %s2496_s19, %s2492_s18  ;;  %p49_p13 = scmp.eq.s32.totalorder %s2500_s20, 0 }
  0x8b   : > { %p54_p0 = scmp.ne.s32.totalorder %s2492_s18, %s2488_s17  ;;  %p3164_p5 = scmp.eq.s32.totalorder %s2610_s23, 0 }
  0x8c   : > { %s2749_s15 = scalar_select %p39_p1, %s2496_s19, %s41_s14  }
  0x8d   : > { %p50_p2 = por %p49_p13, %p48_p3  ;;  %p2753_p7 = por %p3164_p5, %p54_p0 }
  0x8e   : > { %3163 = sst [smem:[#allocation31_spill]] %s2749_s15  ;;  %p298_p9 = scmp.eq.s32.totalorder %s2610_s23, 1 }
  0x8f   : > { %s3165_s21 = scalar_select %p2753_p7, 1, 0 }
  0x90   : > { %p304_p4 = scmp.eq.s32.totalorder %s1754_s2, 1  ;;  %p2017_p10 = scmp.lt.s32.totalorder %s2500_s20, 2 }
  0x91   : > { %s3131_s24 = sand.u32 1, %s2496_s19   ;;  %p2760_p11 = por %p298_p9, %p48_p3 }
  0x92   : > { %p2764_p12 = por %p304_p4, %p54_p0  ;;  %s2770_s26 = sshll.u32 %s3131_s24, 3 }
  0x93   : > { %s3166_s25 = scalar_select %p2760_p11, 1, 0 }
  0x94   : > { %s3167_s28 = scalar_select %p2764_p12, 1, 0 }
  0x95   : > { %s2773_s29 = sshll.u32 %s2500_s20, 7  ;;  %p2775_p1 = pnand %p2017_p10, %p50_p2 }
  0x96   : > { %3168 = sst [smem:[#allocation32_spill]] %s3167_s28  ;;  %s436_s12 = sand.u32 1, %s2500_s20  }
  0x97   : > { %s3169_s30 = scalar_select %p2775_p1, 1, 0 }
  0x98   : > { %s3170_s1 = sld [smem:[#allocation33_spill]]  ;;  %s440_s14 = scalar_lea.vmem [#allocation5], %s2770_s26 }
  0x99   : > { %s447_s24 = sshll.u32 %s440_s14, 4  ;;  %s2508_s3 = smov [#allocation10]   ;;  %s2787_s24 = int_to_ptr.vmem [resolvable:$true] %s447_s24 }
  0x9a   : > { %s2789_s5 = sshll.u32 %s2508_s3, 4  ;;  %s2791_s7 = scalar_lea.sflag [#allocation6], %s436_s12  ;;  %s338_s5 = int_to_ptr.vmem [resolvable:$true] %s2789_s5 }
  0x9b   : > { %p2797_p13 = pneg %p2775_p1 }
  0x9d   : > { %s3171_s22 = scalar_select %p2797_p13, 1, 0 }
  0x9e   : > { %s2784_s13 = scalar_lea.hbm %s3170_s1, %s2773_s29  ;;  %s2217_s15 = scalar_lea.hbm %s3170_s1, 256 }
  0x9f   : > { %s2212_s9 = scalar_lea.hbm %s2784_s13, 128  ;;  %p2218_p5 = scmp.lt.u32.totalorder %s2784_s13, %s3170_s1 }
  0xa0   : > { %p2213_p3 = scmp.ne.s32.totalorder %s2784_s13, %s2212_s9  ;;  %p2219_p9 = scmp.lt.u32.totalorder %s2217_s15, %s2212_s9 }
  0xa1   : > { %p2221_p10 = scmp.lt.u32.totalorder %s2212_s9, %s2784_s13 }
  0xa2   : > { %p2215_p0 = pnand %p2797_p13, %p2213_p3  ;;  %p2220_p4 = por %p2219_p9, %p2218_p5 }
  0xa4   : > { %p2216_p2 = pneg %p2215_p0  ;;  %p2222_p12 = por %p2221_p10, %p2220_p4 }
  0xa6   : > { %p2223_p11 = pnand %p2222_p12, %p2216_p2 }
  0xa8   : > { %2226 = shalt.err (!%p2223_p11)
}
  0xa9   : > { %s2227_s12 = scalar_lea.vmem %s2787_s24, 128  ;;  %s2509_s2 = smov [#allocation5]  }
  0xaa   : > { %p2228_p3 = scmp.ne.s32.totalorder %s2787_s24, %s2227_s12  ;;  %s2232_s14 = sshll.u32 %s2509_s2, 4  ;;  %s2233_s14 = int_to_ptr.vmem [resolvable:$false] %s2232_s14 }
  0xab   : > { %s2234_s11 = scalar_lea.vmem %s2233_s14, 256  ;;  %p2235_p6 = scmp.lt.s32.totalorder %s2787_s24, %s2233_s14 }
  0xac   : > { %p2230_p0 = pnand %p2228_p3, %p2797_p13  ;;  %p2236_p8 = scmp.lt.s32.totalorder %s2234_s11, %s2227_s12 }
  0xae   : > { %p2231_p7 = pneg %p2230_p0  ;;  %p2237_p5 = por %p2236_p8, %p2235_p6 }
  0xb0   : > { %p2238_p9 = pnand %p2237_p5, %p2231_p7 }
  0xb2   : > { %2241 = shalt.err (!%p2238_p9)
}
  0xb3   : > { %2001 = dma.hbm_to_vmem [thread:$0]  (!%p2775_p1), %s2784_s13, 128, %s2787_s24, %s2791_s7  }
  0xb4   : > { %s2242_s3 = scalar_lea.hbm %s3118_s4, 16  ;;  %p3172_p6 = scmp.ne.s32.totalorder %s3158_s16, 0 }
  0xb5   : > { %p2243_p11 = scmp.ne.s32.totalorder %s3118_s4, %s2242_s3  ;;  %p2249_p12 = scmp.lt.u32.totalorder %s2242_s3, %s3118_s4 }
  0xb7   : > { %p2245_p8 = pnand %p2243_p11, %p3172_p6 }
  0xb9   : > { %p2246_p7 = pneg %p2245_p8 }
  0xbb   : > { %p2251_p2 = pnand %p2249_p12, %p2246_p7 }
  0xbd   : > { %2254 = shalt.err (!%p2251_p2)
}
  0xbe   : > { %s2255_s11 = scalar_lea.vmem %s338_s5, 16  ;;  %s2262_s24 = scalar_lea.vmem %s338_s5, 32 }
  0xbf   : > { %p2256_p4 = scmp.ne.s32.totalorder %s338_s5, %s2255_s11  ;;  %p2263_p0 = scmp.lt.s32.totalorder %s338_s5, %s338_s5 }
  0xc0   : > { %p2264_p5 = scmp.lt.s32.totalorder %s2262_s24, %s2255_s11 }
  0xc1   : > { %p2258_p10 = pnand %p2256_p4, %p3172_p6 }
  0xc2   : > { %p2265_p9 = por %p2264_p5, %p2263_p0 }
  0xc3   : > { %p2259_p3 = pneg %p2258_p10 }
  0xc5   : > { %p2266_p1 = pnand %p2265_p9, %p2259_p3 }
  0xc7   : > { %2269 = shalt.err (!%p2266_p1)
}
  0xc8   : > { %p3173_p11 = scmp.ne.s32.totalorder %s3156_s27, 0  ;;  %s2510_s9 = smov [#allocation13]  }
  0xc9   : > { %s361_s15 = sshll.u32 %s2510_s9, 4  ;;  %s2511_s3 = smov [#allocation16]   ;;  %s362_s15 = int_to_ptr.vmem [resolvable:$true] %s361_s15 }
  0xca   : > { %1976 = dma.hbm_to_vmem [thread:$0]  (!%p3173_p11), %s3118_s4, 16, %s338_s5, [#allocation9]  }
  0xcb   : > { %s385_s2 = sshll.u32 %s2511_s3, 4  ;;  %s2270_s20 = scalar_lea.hbm %s3120_s6, 16  ;;  %s386_s2 = int_to_ptr.vmem [resolvable:$true] %s385_s2 }
  0xcc   : > { %p2271_p1 = scmp.ne.s32.totalorder %s3120_s6, %s2270_s20  ;;  %p2277_p12 = scmp.lt.u32.totalorder %s2270_s20, %s3120_s6 }
  0xce   : > { %p2273_p8 = pnand %p2271_p1, %p3172_p6 }
  0xd0   : > { %p2274_p7 = pneg %p2273_p8 }
  0xd2   : > { %p2279_p2 = pnand %p2277_p12, %p2274_p7 }
  0xd4   : > { %2282 = shalt.err (!%p2279_p2)
}
  0xd5   : > { %s2283_s5 = scalar_lea.vmem %s362_s15, 16  ;;  %s2290_s13 = scalar_lea.vmem %s362_s15, 32 }
  0xd6   : > { %p2284_p4 = scmp.ne.s32.totalorder %s362_s15, %s2283_s5  ;;  %p2291_p0 = scmp.lt.s32.totalorder %s362_s15, %s362_s15 }
  0xd7   : > { %p2292_p5 = scmp.lt.s32.totalorder %s2290_s13, %s2283_s5 }
  0xd8   : > { %p2286_p10 = pnand %p2284_p4, %p3172_p6 }
  0xd9   : > { %p2293_p9 = por %p2292_p5, %p2291_p0 }
  0xda   : > { %p2287_p3 = pneg %p2286_p10 }
  0xdc   : > { %p2294_p13 = pnand %p2293_p9, %p2287_p3 }
  0xde   : > { %2297 = shalt.err (!%p2294_p13)
}
  0xdf   : > { %1982 = dma.hbm_to_vmem [thread:$0]  (!%p3173_p11), %s3120_s6, 16, %s362_s15, [#allocation12]  }
  0xe0   : > { %s2298_s12 = scalar_lea.hbm %s3122_s8, 16 }
  0xe1   : > { %p2299_p1 = scmp.ne.s32.totalorder %s3122_s8, %s2298_s12  ;;  %p2305_p13 = scmp.lt.u32.totalorder %s2298_s12, %s3122_s8 }
  0xe3   : > { %p2301_p8 = pnand %p2299_p1, %p3172_p6 }
  0xe5   : > { %p2302_p7 = pneg %p2301_p8 }
  0xe7   : > { %p2307_p12 = pnand %p2305_p13, %p2302_p7 }
  0xe9   : > { %2310 = shalt.err (!%p2307_p12)
}
  0xea   : > { %s2311_s5 = scalar_lea.vmem %s386_s2, 16  ;;  %s2318_s15 = scalar_lea.vmem %s386_s2, 32 }
  0xeb   : > { %p2312_p2 = scmp.ne.s32.totalorder %s386_s2, %s2311_s5  ;;  %p2319_p3 = scmp.lt.s32.totalorder %s386_s2, %s386_s2 }
  0xec   : > { %p2320_p0 = scmp.lt.s32.totalorder %s2318_s15, %s2311_s5 }
  0xed   : > { %p2314_p4 = pnand %p2312_p2, %p3172_p6 }
  0xee   : > { %p2321_p5 = por %p2320_p0, %p2319_p3 }
  0xef   : > { %p2315_p10 = pneg %p2314_p4 }
  0xf1   : > { %p2322_p9 = pnand %p2321_p5, %p2315_p10 }
  0xf3   : > { %2325 = shalt.err (!%p2322_p9)
}
  0xf4   : > { %1988 = dma.hbm_to_vmem [thread:$0]  (!%p3173_p11), %s3122_s8, 16, %s386_s2, [#allocation15]  }
  0xf5   : > { %s2512_s3 = smov [#allocation19]   ;;  %s2326_s14 = scalar_lea.hbm %s3124_s10, 16 }
  0xf6   : > { %s407_s20 = sshll.u32 %s2512_s3, 4  ;;  %p2327_p1 = scmp.ne.s32.totalorder %s3124_s10, %s2326_s14  ;;  %s408_s20 = int_to_ptr.vmem [resolvable:$true] %s407_s20 }
  0xf7   : > { %p2333_p13 = scmp.lt.u32.totalorder %s2326_s14, %s3124_s10 }
  0xf8   : > { %p2329_p8 = pnand %p2327_p1, %p3172_p6 }
  0xfa   : > { %p2330_p7 = pneg %p2329_p8 }
  0xfc   : > { %p2335_p12 = pnand %p2333_p13, %p2330_p7 }
  0xfe   : > { %2338 = shalt.err (!%p2335_p12)
}
  0xff   : > { %s2339_s2 = scalar_lea.vmem %s408_s20, 16  ;;  %s2346_s15 = scalar_lea.vmem %s408_s20, 32 }
 0x100   : > { %p2340_p2 = scmp.ne.s32.totalorder %s408_s20, %s2339_s2  ;;  %p2347_p3 = scmp.lt.s32.totalorder %s408_s20, %s408_s20 }
 0x101   : > { %p2348_p0 = scmp.lt.s32.totalorder %s2346_s15, %s2339_s2 }
 0x102   : > { %p2342_p4 = pnand %p2340_p2, %p3172_p6 }
 0x103   : > { %p2349_p5 = por %p2348_p0, %p2347_p3 }
 0x104   : > { %p2343_p10 = pneg %p2342_p4 }
 0x106   : > { %p2350_p9 = pnand %p2349_p5, %p2343_p10 }
 0x108   : > { %2353 = shalt.err (!%p2350_p9)
}
 0x109   : > { %1994 = dma.hbm_to_vmem [thread:$0]  (!%p3173_p11), %s3124_s10, 16, %s408_s20, [#allocation18]  }
 0x10a   : > { %s2898_s28 = scalar_lea.hbm %s3114_s0, %s2773_s29  ;;  %s422_s12 = scalar_lea.vmem [#allocation2], %s2770_s26 }
 0x10b   : > { %s429_s14 = sshll.u32 %s422_s12, 4  ;;  %s3174_s27 = sand.u32 1, %s2496_s19   ;;  %s430_s14 = int_to_ptr.vmem [resolvable:$true] %s429_s14 }
 0x10c   : > { %s419_s11 = scalar_lea.sflag [#allocation3], %s3174_s27  ;;  %s2354_s24 = scalar_lea.hbm %s2898_s28, 128 }
 0x10d   : > { %p2355_p6 = scmp.ne.s32.totalorder %s2898_s28, %s2354_s24  ;;  %p3175_p1 = scmp.ne.s32.totalorder %s3171_s22, 0 }
 0x10e   : > { %s2359_s5 = scalar_lea.hbm %s3114_s0, 256  ;;  %p2360_p11 = scmp.lt.u32.totalorder %s2898_s28, %s3114_s0 }
 0x10f   : > { %p2357_p8 = pnand %p2355_p6, %p3175_p1  ;;  %p2361_p13 = scmp.lt.u32.totalorder %s2359_s5, %s2354_s24 }
 0x110   : > { %p2363_p2 = scmp.lt.u32.totalorder %s2354_s24, %s2898_s28 }
 0x111   : > { %p2358_p7 = pneg %p2357_p8  ;;  %p2362_p12 = por %p2361_p13, %p2360_p11 }
 0x113   : > { %p2364_p4 = por %p2363_p2, %p2362_p12 }
 0x115   : > { %p2365_p10 = pnand %p2364_p4, %p2358_p7 }
 0x117   : > { %2368 = shalt.err (!%p2365_p10)
}
 0x118   : > { %s2369_s13 = scalar_lea.vmem %s430_s14, 128  ;;  %s2513_s9 = smov [#allocation2]  }
 0x119   : > { %p2370_p3 = scmp.ne.s32.totalorder %s430_s14, %s2369_s13  ;;  %s2374_s3 = sshll.u32 %s2513_s9, 4  ;;  %s2375_s3 = int_to_ptr.vmem [resolvable:$false] %s2374_s3 }
 0x11a   : > { %s2376_s16 = scalar_lea.vmem %s2375_s3, 256  ;;  %p2377_p9 = scmp.lt.s32.totalorder %s430_s14, %s2375_s3 }
 0x11b   : > { %p2372_p0 = pnand %p2370_p3, %p3175_p1  ;;  %p2378_p6 = scmp.lt.s32.totalorder %s2376_s16, %s2369_s13 }
 0x11d   : > { %p2373_p5 = pneg %p2372_p0  ;;  %p2379_p8 = por %p2378_p6, %p2377_p9 }
 0x11f   : > { %p2380_p11 = pnand %p2379_p8, %p2373_p5 }
 0x121   : > { %2383 = shalt.err (!%p2380_p11)
}
 0x122   : > { %p3176_p13 = scmp.ne.s32.totalorder %s3169_s30, 0  ;;  %s3177_s24 = sld [smem:[#allocation34_spill]] }
 0x123   : > { %s458_s1 = scalar_lea.vmem [#allocation7], %s2770_s26 }
 0x124   : > { %1998 = dma.hbm_to_vmem [thread:$0]  (!%p3176_p13), %s2898_s28, 128, %s430_s14, %s419_s11  }
 0x125   : > { %s465_s5 = sshll.u32 %s458_s1, 4  ;;  %s466_s5 = int_to_ptr.vmem [resolvable:$true] %s465_s5 }
 0x128   : > { %s2924_s20 = scalar_lea.hbm %s3177_s24, %s2773_s29  ;;  %s2389_s28 = scalar_lea.hbm %s3177_s24, 256 }
 0x129   : > { %s2384_s2 = scalar_lea.hbm %s2924_s20, 128  ;;  %p2390_p4 = scmp.lt.u32.totalorder %s2924_s20, %s3177_s24 }
 0x12a   : > { %p2385_p7 = scmp.ne.s32.totalorder %s2924_s20, %s2384_s2  ;;  %p2391_p10 = scmp.lt.u32.totalorder %s2389_s28, %s2384_s2 }
 0x12b   : > { %p2393_p0 = scmp.lt.u32.totalorder %s2384_s2, %s2924_s20 }
 0x12c   : > { %p2387_p12 = pnand %p2385_p7, %p3175_p1  ;;  %p2392_p3 = por %p2391_p10, %p2390_p4 }
 0x12e   : > { %p2388_p2 = pneg %p2387_p12  ;;  %p2394_p5 = por %p2393_p0, %p2392_p3 }
 0x130   : > { %p2395_p9 = pnand %p2394_p5, %p2388_p2 }
 0x132   : > { %2398 = shalt.err (!%p2395_p9)
}
 0x133   : > { %s2399_s26 = scalar_lea.vmem %s466_s5, 128  ;;  %s2514_s29 = smov [#allocation7]  }
 0x134   : > { %p2400_p6 = scmp.ne.s32.totalorder %s466_s5, %s2399_s26  ;;  %s2404_s9 = sshll.u32 %s2514_s29, 4  ;;  %s2405_s9 = int_to_ptr.vmem [resolvable:$false] %s2404_s9 }
 0x135   : > { %s2406_s3 = scalar_lea.vmem %s2405_s9, 256  ;;  %p2407_p7 = scmp.lt.s32.totalorder %s466_s5, %s2405_s9 }
 0x136   : > { %p2402_p8 = pnand %p2400_p6, %p3175_p1  ;;  %p2408_p12 = scmp.lt.s32.totalorder %s2406_s3, %s2399_s26 }
 0x138   : > { %p2403_p11 = pneg %p2402_p8  ;;  %p2409_p13 = por %p2408_p12, %p2407_p7 }
 0x13a   : > { %p2410_p4 = pnand %p2409_p13, %p2403_p11 }
 0x13c   : > { %2413 = shalt.err (!%p2410_p4)
}
 0x13d   : > { %p3178_p10 = scmp.ne.s32.totalorder %s3169_s30, 0  ;;  %s3179_s16 = sld [smem:[#allocation29_spill]] }
 0x13f   : > { %2004 = dma.hbm_to_vmem [thread:$0]  (!%p3178_p10), %s2924_s20, 128, %s466_s5, %s2791_s7  }
 0x143   : > { %p3180_p2 = scmp.ne.s32.totalorder %s3179_s16, 0 }
 0x144   : > { %s2948_s22 = sand.u32 (!%p3180_p2), 1, %s2492_s18   ;;  %p3181_p1 = scmp.ne.s32.totalorder (!%p3180_p2), %s3165_s21, 0 }
 0x145   : > { %474 = sbr.rel (%p3180_p2) target bundleno = 2102 (0x836), region = 64  ;;  %s2951_s12 = sshll.u32 (!%p3180_p2), %s2948_s22, 3 }
 0x146   : > { %s477_s27 = scalar_lea.sflag (!%p3180_p2), [#allocation3], %s2948_s22  ;;  %s480_s1 = scalar_lea.vmem (!%p3180_p2), [#allocation2], %s2951_s12 }
 0x14c   : > { %2459 = dma.done.wait (%p3181_p1), %s477_s27, 128  }
 0x14d   : > { %2461 = vsyncadd (%p3181_p1), %s477_s27, 4294967168  ;;  %s485_s7 = sand.u32 1, %s2610_s23   ;;  %s489_s20 = scalar_lea.vmem [#allocation5], %s2951_s12 }
 0x14e   : > { %s486_s30 = scalar_lea.sflag [#allocation6], %s485_s7 }
 0x14f   : > { %2463 = dma.done.wait (%p3181_p1), %s486_s30, 256  }
 0x150   : > { %2465 = vsyncadd (%p3181_p1), %s486_s30, 4294967040  ;;  %s498_s5 = scalar_lea.vmem [#allocation7], %s2951_s12  ;;  %p3182_p13 = scmp.eq.s32.totalorder %s2610_s23, 0 }
 0x152   : > { %2467 = dma.done.wait (%p3182_p13), [#allocation9], 528   ;;  %p3183_p3 = pmov %p3182_p13 }
 0x154   : > { %2469 = vsyncadd (%p3183_p3), [#allocation9], 4294966768  ;;  %p3184_p0 = pmov %p3183_p3 }
 0x156   : > { %2471 = dma.done.wait (%p3184_p0), [#allocation12], 528   ;;  %p3185_p5 = pmov %p3184_p0 }
 0x157   : > { %p3186_p9 = pmov %p3184_p0 }
 0x158   : > { %2473 = vsyncadd (%p3185_p5), [#allocation12], 4294966768 }
 0x159   : > { %2475 = dma.done.wait (%p3186_p9), [#allocation15], 528   ;;  %p3187_p6 = pmov %p3184_p0 }
 0x15a   : > { %p3188_p8 = pmov %p3184_p0 }
 0x15b   : > { %2477 = vsyncadd (%p3187_p6), [#allocation15], 4294966768 }
 0x15c   : > { %2479 = dma.done.wait (%p3188_p8), [#allocation18], 32   ;;  %p3189_p11 = pmov %p3184_p0 }
 0x15d   : > { %v2515_v0 = vmov 0.0|0.0   ;;  %vm2516_vm0 = vmmov 0   ;;  %v2517_v1 = vmov 0.0   ;;  %v666_v2 = vld [vmem:[#allocation11] sm:$0xff]  ;;  %v667_v3 = vld [vmem:[#allocation11 + $0x8] sm:$0xff]  ;;  %v668_v7 = vld [vmem:[#allocation11 + $0x10] sm:$0xff] }
 0x15e   : > { %2481 = vsyncadd (%p3189_p11), [#allocation18], 4294967264  ;;  %1918 = vmatprep.subr.bf16.mxu1 %v2515_v0  ;;  %1912 = vmatprep.subr.bf16.mxu0 %v2515_v0  ;;  %v580_v4 = vld [vmem:[#allocation8] sm:$0xff]  ;;  %v1919_v5 = vpack.c.bf16 %v667_v3, %v666_v2  ;;  %v581_v6 = vld [vmem:[#allocation8 + $0x8] sm:$0xff]  ;;  %vm591_vm1 = vcmask 261120   ;;  %vm751_vm2 = vcmask 64512  }
 0x15f   : > { %1858 = vmatprep.mubr.msk.f32.mxu1 %vm2516_vm0, %v2517_v1  ;;  %1847 = vmatprep.mubr.msk.f32.mxu0 %vm2516_vm0, %v2517_v1  ;;  %v669_v8 = vld [vmem:[#allocation11 + $0x18] sm:$0xff]  ;;  %v1913_v9 = vpack.c.bf16 %v581_v6, %v580_v4  ;;  %v582_v10 = vld [vmem:[#allocation8 + $0x10] sm:$0xff]  ;;  %v1786_v16 = vld [vmem:[#allocation13] ss:$0 sm:$0xff]  ;;  %s2518_s21 = smov 112   ;;  %s2519_s2 = smov 120  }
 0x160   : > { %v583_v11 = vld [vmem:[#allocation8 + $0x18] sm:$0xff]  ;;  %1920 = vmatpush3.bf16.msra.mxu1 %v1919_v5  ;;  %v1922_v12 = vpack.c.bf16 %v669_v8, %v668_v7  ;;  %v665_v14 = vld [vmem:[%s489_s20] sm:$0xff]  ;;  %s2520_s15 = smov 104   ;;  %s2521_s13 = smov 96   ;;  %vm1431_vm3 = vcmask 130048   ;;  %vm1433_vm4 = vcmask 195584  }
 0x161   : > { %1914 = vmatpush3.bf16.msra.mxu0 %v1913_v9  ;;  %1921 = vmatprep.subr.bf16.mxu1 %v2515_v0  ;;  %v1916_v13 = vpack.c.bf16 %v583_v11, %v582_v10  ;;  %v2994_v15 = vld [vmem:[%s480_s1] sm:$0xff]  ;;  %v1784_v18 = vld [vmem:[#allocation10] ss:$0 sm:$0xff]  ;;  %s2522_s28 = smov 80   ;;  %s2523_s14 = smov 72  }
 0x162   : > { %1915 = vmatprep.subr.bf16.mxu0 %v2515_v0  ;;  %v750_v31 = vld [vmem:[%s498_s5] sm:$0xff]  ;;  %s2524_s11 = smov 88   ;;  %s2525_s26 = smov 8  }
 0x163   : > { %s2526_s29 = smov 16   ;;  %s2527_s9 = smov 24  }
 0x164   : > { %1923 = vmatpush3.bf16.msra.mxu1 %v1922_v12  ;;  %s1805_s3 = sshll.u32 %s2610_s23, 7  ;;  %s578_s16 = scalar_lea.vmem [#allocation20], %s2951_s12 }
 0x165   : > { %1917 = vmatpush3.bf16.msra.mxu0 %v1916_v13  ;;  %1861 = vmatprep.subr.mxu1 %v2517_v1  ;;  %s1565_s27 = sshll.u32 %s578_s16, 4  ;;  %s3190_s30 = sld [smem:[#allocation39_spill]]  ;;  %s3071_s27 = int_to_ptr.vmem [resolvable:$true] %s1565_s27 }
 0x166   : > { %1871 = vmatprep.subr.mxu0 %v2517_v1  ;;  %s1552_s5 = scalar_lea.sflag [#allocation4], %s2948_s22  ;;  %p3191_p12 = scmp.ne.s32.totalorder %s3166_s25, 0 }
 0x167   : > { %1859 = vmatmul.mubr.msk.f32.vlgmr.msra.gmra.mrb[0].mxu1 %vm591_vm1, %v665_v14  ;;  %s2528_s23 = smov [#allocation20]  }
 0x168   : > { %1848 = vmatmul.mubr.msk.f32.vlgmr.msra.gmra.mrb[0].mxu0 %vm591_vm1, %v2994_v15  ;;  %1863 = vmatprep.mubr.msk.f32.mxu1 %vm2516_vm0, %v2517_v1  ;;  %s2418_s12 = sshll.u32 %s2528_s23, 4  ;;  %s2419_s12 = int_to_ptr.vmem [resolvable:$false] %s2418_s12 }
 0x169   : > { %1873 = vmatprep.mubr.msk.f32.mxu0 %vm2516_vm0, %v2517_v1  ;;  %p2421_p2 = scmp.lt.s32.totalorder %s3071_s27, %s2419_s12 }
 0x16b   : > { %s3069_s20 = scalar_lea.hbm %s3190_s30, %s1805_s3 }
 0x23a   : > { %v746_v17 = vpop.f32.mrb[0].mxu1 }
 0x23b   : > { %v3005_v19 = vadd.f32 %v1786_v16, %v746_v17  ;;  %v1860_v20 = vpop.f32.mrb[1].mxu1  ;;  %v661_v21 = vpop.f32.mrb[0].mxu0 }
 0x23c   : > { %v1849_v22 = vpop.f32.mrb[1].mxu0  ;;  %v662_v23 = vadd.f32 %v1784_v18, %v661_v21 }
 0x23d   : > { %1086 = vrot.lane.b32.xlu1 %v3005_v19, %s2518_s21  ;;  %919 = vrot.lane.b32.xlu0 %v3005_v19, %s2519_s2 }
 0x23e   : > { %1862 = vmatpush3.xpose.msk.msra.mxu1 %vm751_vm2, %v3005_v19 }
 0x23f   : > { %1866 = vmatprep.subr.mxu1 %v2517_v1 }
 0x241   : > { %1864 = vmatmul.mubr.msk.f32.vlgmr.msra.gmra.mrb[2].mxu1 %vm751_vm2, %v662_v23  ;;  %1084 = vrot.lane.b32.xlu1 %v662_v23, %s2518_s21  ;;  %s2414_s21 = scalar_lea.vmem %s3071_s27, 128 }
 0x242   : > { %917 = vrot.lane.b32.xlu0 %v662_v23, %s2519_s2  ;;  %1868 = vmatprep.mubr.msk.f32.mxu1 %vm2516_vm0, %v2517_v1  ;;  %p2415_p7 = scmp.ne.s32.totalorder %s3071_s27, %s2414_s21  ;;  %s2420_s2 = scalar_lea.vmem %s2419_s12, 256 }
 0x243   : > { %p2422_p1 = scmp.lt.s32.totalorder %s2420_s2, %s2414_s21 }
 0x244   : > { %p2416_p4 = pnand %p2415_p7, %p3191_p12 }
 0x245   : > { %1251 = vrot.lane.b32.xlu1 %v662_v23, %s2520_s15  ;;  %p2423_p13 = por %p2422_p1, %p2421_p2 }
 0x246   : > { %1253 = vrot.lane.b32.xlu0 %v3005_v19, %s2520_s15  ;;  %p2417_p10 = pneg %p2416_p4 }
 0x248   : > { %p2424_p3 = pnand %p2423_p13, %p2417_p10 }
 0x2af   : > { %v920_v24 = vpop.permute.xlu0 %919  ;;  %v1087_v25 = vpop.permute.xlu1 %1086 }
 0x2b0   : > { %1872 = vmatpush3.xpose.msk.msra.mxu0 %vm751_vm2, %v920_v24 }
 0x2b1   : > { %1881 = vmatprep.subr.mxu0 %v2517_v1 }
 0x2b3   : > { %v1085_v27 = vpop.permute.xlu1 %1084 }
 0x2b4   : > { %v918_v26 = vpop.permute.xlu0 %917 }
 0x2b5   : > { %1874 = vmatmul.mubr.msk.f32.vlgmr.msra.gmra.mrb[2].mxu0 %vm751_vm2, %v918_v26 }
 0x2b6   : > { %1882 = vmatpush3.xpose.msk.msra.mxu0 %vm751_vm2, %v1087_v25  ;;  %1883 = vmatprep.mubr.msk.f32.mxu0 %vm2516_vm0, %v2517_v1 }
 0x2b7   : > { %1891 = vmatprep.subr.mxu0 %v2517_v1  ;;  %v1252_v29 = vpop.permute.xlu1 %1251 }
 0x2b8   : > { %v1254_v28 = vpop.permute.xlu0 %1253 }
 0x2b9   : > { %1884 = vmatmul.mubr.msk.f32.vlgmr.msra.gmra.mrb[4].mxu0 %vm751_vm2, %v1085_v27 }
 0x2ba   : > { %1892 = vmatpush3.xpose.msk.msra.mxu0 %vm751_vm2, %v1254_v28  ;;  %1893 = vmatprep.mubr.msk.f32.mxu0 %vm2516_vm0, %v2517_v1  ;;  %v1435_v28 = vld [vmem:[#allocation14] sm:$0xff] }
 0x2bb   : > { %1924 = vmatprep.subr.bf16.mxu0 %v2515_v0 }
 0x2bd   : > { %1894 = vmatmul.mubr.msk.f32.vlgmr.msra.gmra.mrb[6].mxu0 %vm751_vm2, %v1252_v29  ;;  %v1436_v29 = vld [vmem:[#allocation14 + $0x8] sm:$0xff] }
 0x2be   : > { %1909 = vmatprep.mubr.msk.f32.mxu0 %vm2516_vm0, %v2517_v1 }
 0x314   : > { %v824_v30 = vpop.f32.mrb[2].mxu1 }
 0x315   : > { %v828_v32 = vmul.f32 0.35355338, %v824_v30  ;;  %v1865_v33 = vpop.f32.mrb[3].mxu1  ;;  %v1925_v30 = vpack.c.bf16 %v1436_v29, %v1435_v28 }
 0x317   : > { %v829_v34 = vadd.f32 %v828_v32, %v750_v31  ;;  %1926 = vmatpush3.bf16.msra.mxu0 %v1925_v30  ;;  %v1438_v32 = vld [vmem:[#allocation14 + $0x18] sm:$0xff] }
 0x318   : > { %1927 = vmatprep.subr.bf16.mxu0 %v2515_v0 }
 0x319   : > { %v830_v35 = vsel %vm751_vm2, %v829_v34, -inf }
 0x31a   : > { %831 = vmax.xlane.f32.xlu0 %v830_v35 }
 0x388   : > { %v991_v36 = vpop.f32.mrb[2].mxu0 }
 0x389   : > { %v995_v37 = vmul.f32 0.35355338, %v991_v36  ;;  %v1875_v38 = vpop.f32.mrb[3].mxu0 }
 0x38b   : > { %v996_v39 = vadd.f32 %v995_v37, %v750_v31 }
 0x38c   : > { %v1158_v40 = vpop.f32.mrb[4].mxu0 }
 0x38d   : > { %v1162_v41 = vmul.f32 0.35355338, %v1158_v40  ;;  %v1885_v42 = vpop.f32.mrb[5].mxu0  ;;  %v997_v43 = vsel %vm751_vm2, %v996_v39, -inf }
 0x38e   : > { %998 = vmax.xlane.f32.xlu1 %v997_v43 }
 0x38f   : > { %v1163_v44 = vadd.f32 %v1162_v41, %v750_v31 }
 0x390   : > { %v1325_v45 = vpop.f32.mrb[6].mxu0 }
 0x391   : > { %v1329_v46 = vmul.f32 0.35355338, %v1325_v45  ;;  %v1895_v47 = vpop.f32.mrb[7].mxu0  ;;  %v1164_v48 = vsel %vm751_vm2, %v1163_v44, -inf }
 0x392   : > { %1165 = vmax.xlane.f32.xlu0 %v1164_v48 }
 0x393   : > { %v1330_v49 = vadd.f32 %v1329_v46, %v750_v31  ;;  %v1437_v31 = vld [vmem:[#allocation14 + $0x10] sm:$0xff] }
 0x394   : > { %v1928_v33 = vpack.c.bf16 %v1438_v32, %v1437_v31 }
 0x395   : > { %v1331_v50 = vsel %vm751_vm2, %v1330_v49, -inf }
 0x396   : > { %1332 = vmax.xlane.f32.xlu0 %v1331_v50  ;;  %1929 = vmatpush3.bf16.msra.mxu0 %v1928_v33 }
 0x39f   : > { %841 = vrot.lane.b32.xlu1 %v3005_v19, %s2521_s13 }
 0x3a7   : > { %v832_v51 = vpop.xlane.xlu0 %831 }
 0x3a8   : > { %v833_v52 = vsub.f32 %v829_v34, %v832_v51 }
 0x3aa   : > { %v834_v53 = vmul.f32 1.442695, %v833_v52 }
 0x3ac   : > { %2082 = vpow2.f32 %v834_v53 }
 0x3b6   : > { %v2083_v54 = vpop.eup %2082 }
 0x3b7   : > { %v836_v55 = vsel %vm751_vm2, %v2083_v54, 0.0 }
 0x3c3   : > { %837 = vadd.xlane.f32.xlu1 %v836_v55 }
 0x41b   : > { %v999_v56 = vpop.xlane.xlu1 %998 }
 0x41c   : > { %v1000_v57 = vsub.f32 %v996_v39, %v999_v56 }
 0x41e   : > { %v1001_v58 = vmul.f32 1.442695, %v1000_v57 }
 0x41f   : > { %v842_v59 = vpop.permute.xlu1 %841  ;;  %v1166_v60 = vpop.xlane.xlu0 %1165 }
 0x420   : > { %2084 = vpow2.f32 %v1001_v58  ;;  %v1167_v61 = vsub.f32 %v1163_v44, %v1166_v60  ;;  %1867 = vmatpush3.msra.mxu1 %v842_v59  ;;  %v1800_v44 = vld [vmem:[#allocation16] ss:$0 sm:$0xff]  ;;  %v1803_v60 = vld [vmem:[#allocation19] ss:$0 sm:$0xff] }
 0x421   : > { %1876 = vmatprep.subr.mxu1 %v2517_v1 }
 0x422   : > { %v1168_v62 = vmul.f32 1.442695, %v1167_v61 }
 0x423   : > { %v1333_v63 = vpop.xlane.xlu0 %1332 }
 0x424   : > { %2086 = vpow2.f32 %v1168_v62  ;;  %v1334_v2 = vsub.f32 %v1330_v49, %v1333_v63 }
 0x426   : > { %v1335_v3 = vmul.f32 1.442695, %v1334_v2 }
 0x428   : > { %2088 = vpow2.f32 %v1335_v3 }
 0x42a   : > { %v2085_v4 = vpop.eup %2084 }
 0x42b   : > { %v1003_v5 = vsel %vm751_vm2, %v2085_v4, 0.0 }
 0x42c   : > { %1004 = vadd.xlane.f32.xlu0 %v1003_v5 }
 0x42e   : > { %v2087_v6 = vpop.eup %2086 }
 0x42f   : > { %v1170_v7 = vsel %vm751_vm2, %v2087_v6, 0.0 }
 0x430   : > { %1171 = vadd.xlane.f32.xlu1 %v1170_v7 }
 0x432   : > { %v2089_v8 = vpop.eup %2088 }
 0x433   : > { %v1337_v9 = vsel %vm751_vm2, %v2089_v8, 0.0 }
 0x434   : > { %1338 = vadd.xlane.f32.xlu0 %v1337_v9 }
 0x441   : > { %1175 = vrot.lane.b32.xlu1 %v3005_v19, %s2522_s28 }
 0x445   : > { %1342 = vrot.lane.b32.xlu1 %v3005_v19, %s2523_s14 }
 0x44a   : > { %1008 = vrot.lane.b32.xlu0 %v3005_v19, %s2524_s11 }
 0x450   : > { %v838_v10 = vpop.xlane.xlu1 %837 }
 0x451   : > { %2090 = vrcp.f32 %v838_v10 }
 0x45b   : > { %v2091_v11 = vpop.eup %2090 }
 0x45c   : > { %v840_v12 = vmul.f32 %v2091_v11, %v2083_v54 }
 0x45e   : > { %1869 = vmatmul.mubr.msk.f32.vlgmr.msra.gmra.mrb[4].mxu1 %vm751_vm2, %v840_v12 }
 0x45f   : > { %1878 = vmatprep.mubr.msk.f32.mxu1 %vm2516_vm0, %v2517_v1 }
 0x4b9   : > { %v1005_v13 = vpop.xlane.xlu0 %1004 }
 0x4ba   : > { %2092 = vrcp.f32 %v1005_v13 }
 0x4bd   : > { %v1172_v14 = vpop.xlane.xlu1 %1171 }
 0x4be   : > { %2094 = vrcp.f32 %v1172_v14 }
 0x4c1   : > { %v1339_v16 = vpop.xlane.xlu0 %1338  ;;  %v1176_v20 = vpop.permute.xlu1 %1175 }
 0x4c2   : > { %2096 = vrcp.f32 %v1339_v16 }
 0x4c4   : > { %v2093_v17 = vpop.eup %2092 }
 0x4c5   : > { %v1007_v18 = vmul.f32 %v2093_v17, %v2085_v4  ;;  %v1009_v21 = vpop.permute.xlu0 %1008  ;;  %v1343_v23 = vpop.permute.xlu1 %1342 }
 0x4c6   : > { %1877 = vmatpush3.msra.mxu1 %v1009_v21 }
 0x4c7   : > { %1879 = vmatmul.mubr.msk.f32.vlgmr.msra.gmra.mrb[6].mxu1 %vm751_vm2, %v1007_v18  ;;  %1886 = vmatprep.subr.mxu1 %v2517_v1 }
 0x4c8   : > { %v2095_v19 = vpop.eup %2094  ;;  %1887 = vmatpush3.msra.mxu1 %v1176_v20  ;;  %1888 = vmatprep.mubr.msk.f32.mxu1 %vm2516_vm0, %v2517_v1 }
 0x4c9   : > { %v1174_v22 = vmul.f32 %v2095_v19, %v2087_v6  ;;  %1896 = vmatprep.subr.mxu1 %v2517_v1 }
 0x4cb   : > { %1889 = vmatmul.mubr.msk.f32.vlgmr.msra.gmra.mrb[8].mxu1 %vm751_vm2, %v1174_v22 }
 0x4cc   : > { %v2097_v24 = vpop.eup %2096  ;;  %1897 = vmatpush3.msra.mxu1 %v1343_v23  ;;  %1898 = vmatprep.mubr.msk.f32.mxu1 %vm2516_vm0, %v2517_v1 }
 0x4cd   : > { %v1341_v25 = vmul.f32 %v2097_v24, %v2089_v8 }
 0x4cf   : > { %1899 = vmatmul.mubr.msk.f32.vlgmr.msra.gmra.mrb[10].mxu1 %vm751_vm2, %v1341_v25 }
 0x531   : > { %v913_v26 = vpop.f32.mrb[4].mxu1 }
 0x532   : > { %v1870_v27 = vpop.f32.mrb[5].mxu1 }
 0x59a   : > { %v1080_v34 = vpop.f32.mrb[6].mxu1 }
 0x59b   : > { %1419 = vrot.lane.b32.xlu0 %v1080_v34, %s2525_s26  ;;  %v1880_v35 = vpop.f32.mrb[7].mxu1 }
 0x59e   : > { %v1247_v1 = vpop.f32.mrb[8].mxu1 }
 0x59f   : > { %1423 = vrot.lane.b32.xlu1 %v1247_v1, %s2526_s29  ;;  %v1890_v36 = vpop.f32.mrb[9].mxu1 }
 0x5a2   : > { %v1414_v37 = vpop.f32.mrb[10].mxu1 }
 0x5a3   : > { %1427 = vrot.lane.b32.xlu0 %v1414_v37, %s2527_s9  ;;  %v1900_v38 = vpop.f32.mrb[11].mxu1 }
 0x60d   : > { %v1420_v39 = vpop.permute.xlu0 %1419 }
 0x60e   : > { %v1430_v0 = vsel %vm751_vm2, %v913_v26, %v1420_v39 }
 0x611   : > { %v1424_v40 = vpop.permute.xlu1 %1423 }
 0x612   : > { %v1432_v41 = vsel %vm1431_vm3, %v1430_v0, %v1424_v40 }
 0x615   : > { %v1428_v42 = vpop.permute.xlu0 %1427 }
 0x616   : > { %v1434_v43 = vsel %vm1433_vm4, %v1432_v41, %v1428_v42 }
 0x617   : > { %1910 = vmatmul.mubr.msk.f32.vlgmr.msra.gmra.mrb[8].mxu0 %vm591_vm1, %v1434_v43 }
 0x6ea   : > { %v1515_v45 = vpop.f32.mrb[8].mxu0 }
 0x6eb   : > { %v1516_v46 = vadd.f32 %v1800_v44, %v1515_v45  ;;  %v1911_v47 = vpop.f32.mrb[9].mxu0 }
 0x6ed   : > { %v1519_v48 = vadd.f32 %v1516_v46, %v2994_v15  ;;  %v1802_v15 = vld [vmem:[#allocation17] ss:$0 sm:$0xff] }
 0x6ef   : > { %v1522_v49 = vsel %vm591_vm1, %v1519_v48, 0.0 }
 0x6f0   : > { %1523 = vadd.xlane.f32.xlu1 %v1522_v49 }
 0x77d   : > { %v1524_v50 = vpop.xlane.xlu1 %1523 }
 0x77e   : > { %v1526_v51 = vmul.f32 0.03125, %v1524_v50 }
 0x780   : > { %v1527_v52 = vsub.f32 %v1519_v48, %v1526_v51 }
 0x782   : > { %v1528_v53 = vmul.f32 %v1527_v52, %v1527_v52 }
 0x784   : > { %v1529_v54 = vsel %vm591_vm1, %v1528_v53, 0.0 }
 0x785   : > { %1530 = vadd.xlane.f32.xlu0 %v1529_v54 }
 0x812   : > { %v1531_v55 = vpop.xlane.xlu0 %1530 }
 0x813   : > { %v1532_v56 = vmul.f32 0.03125, %v1531_v55 }
 0x815   : > { %v1533_v57 = vadd.f32 1e-12, %v1532_v56 }
 0x817   : > { %2098 = vrsqrt.f32 %v1533_v57 }
 0x821   : > { %v2099_v58 = vpop.eup %2098 }
 0x822   : > { %v1535_v59 = vmul.f32 %v2099_v58, %v1527_v52 }
 0x824   : > { %v1542_v61 = vmul.f32 %v1802_v15, %v1535_v59 }
 0x826   : > { %v1549_v62 = vadd.f32 %v1803_v60, %v1542_v61 }
 0x828   : > { %1550 = vst.msk [vmem:[%s578_s16] sm:$0xff] %vm591_vm1, %v1549_v62 }
 0x829   : > { %2427 = shalt.err (!%p2424_p3)
}
 0x82a   : > { %s2428_s22 = scalar_lea.hbm %s3069_s20, 128  ;;  %s2432_s28 = scalar_lea.hbm %s3190_s30, 256 }
 0x82b   : > { %p2429_p0 = scmp.ne.s32.totalorder %s3069_s20, %s2428_s22  ;;  %p2433_p6 = scmp.lt.u32.totalorder %s3069_s20, %s3190_s30 }
 0x82c   : > { %p2434_p8 = scmp.lt.u32.totalorder %s2432_s28, %s2428_s22  ;;  %p2436_p7 = scmp.lt.u32.totalorder %s2428_s22, %s3069_s20 }
 0x82d   : > { %p2430_p5 = pnand %p2429_p0, %p3191_p12 }
 0x82e   : > { %p2435_p11 = por %p2434_p8, %p2433_p6 }
 0x82f   : > { %p2431_p9 = pneg %p2430_p5 }
 0x830   : > { %p2437_p4 = por %p2436_p7, %p2435_p11 }
 0x832   : > { %p2438_p10 = pnand %p2437_p4, %p2431_p9 }
 0x834   : > { %2441 = shalt.err (!%p2438_p10)
}
 0x835   : > { %1968 = dma.vmem_to_hbm [thread:$0]  (%p3191_p12), %s3071_s27, 128, %s3069_s20, %s1552_s5  }
 0x836 PF: > { %s3192_s26 = sld [smem:[#allocation32_spill]]  ;;  %s3193_s29 = sld [smem:[#allocation28_spill]] }
 0x837   : > { %s1577_s9 = sand.u32 1, %s2488_s17  }
 0x838   : > { %s1578_s3 = scalar_lea.sflag [#allocation4], %s1577_s9 }
 0x83c   : > { %p3194_p2 = scmp.ne.s32.totalorder %s3192_s26, 0  ;;  %p3195_p1 = scmp.ge.s32.totalorder %s3193_s29, 2 }
 0x83e   : > { %p2006_p13 = pnand %p3195_p1, %p3194_p2 }
 0x840   : > { %2483 = dma.done.wait (!%p2006_p13), %s1578_s3, 128  }
 0x841   : > { %2485 = vsyncadd (!%p2006_p13), %s1578_s3, 4294967168  ;;  %s3196_s20 = sld [smem:[#allocation30_spill]]  ;;  %s3197_s16 = sld [smem:[#allocation31_spill]] }
 0x842   : > { %s3198_s17 = smov %s2492_s18  ;;  %s3199_s18 = smov %s2496_s19 }
 0x847   : > { %p31_p3 = scmp.ge.s32.totalorder %s3196_s20, 4   ;;  %s3200_s19 = smov %s3197_s16 }
 0x849   :  { %33 = sbr.rel (!%p31_p3) target bundleno = 19 (0x13), region = 165 }
 0x850   :  { %1583 = vsyncpa [#allocation3], 1 }
 0x851   :  { %1585 = vsyncpa [#allocation3 + $0x1], 1 }
 0x852   :  { %1586 = vsyncpa [#allocation6], 1 }
 0x853   :  { %1588 = vsyncpa [#allocation6 + $0x1], 1 }
 0x854   :  { %1589 = vsyncpa [#allocation9], 1 }
 0x855   :  { %1590 = vsyncpa [#allocation12], 1 }
 0x856   :  { %1591 = vsyncpa [#allocation15], 1 }
 0x857   :  { %1592 = vsyncpa [#allocation18], 1 }
 0x858   :  { %1593 = vsyncpa [#allocation4], 1 }
 0x859   :  { %1595 = vsyncpa [#allocation4 + $0x1], 1 }

</bundles_post_ra>
